<compile_context>
chip_gen: v7x
topology: tpu7x:2x2x1
jax: 0.10.0
libtpu: 0.0.40
codegen_flags: <defaults>
</compile_context>

<pallas_src>
import functools

import jax
import jax.numpy as jnp
from jax.experimental import pallas as pl
from jax.experimental.pallas import tpu as pltpu


def _round_up(a, b):
    return ((a + b - 1) // b) * b


def pfn_kernel(x_ref, w_ref, bias_ref, o_ref, *, nc, n_chunks):
    # x_ref:   (TP, n_chunks * nc * C_in_p)  bf16, lane-dense packed points
    # w_ref:   (nc * C_in_p, nc * C_out)     bf16, block-diagonal folded weight
    # bias_ref:(1, C_out)                    f32, folded BN bias (post-max)
    # o_ref:   (TP, C_out)                   f32, max over points, bias+ReLU
    kw = w_ref.shape[0]                      # lane-slab width (128-aligned)
    c_out = o_ref.shape[-1]
    w = w_ref[...]

    def chunk_max(c):
        # 128-lane-aligned static slab: nc points of this chunk, no reshape.
        xs = x_ref[:, c * kw:(c + 1) * kw]                         # (tp, kw)
        y = jnp.dot(xs, w, preferred_element_type=jnp.float32)     # (tp, nc*c_out)
        m = y[:, :c_out]
        for j in range(1, nc):                                     # aligned VPU maxes
            m = jnp.maximum(m, y[:, j * c_out:(j + 1) * c_out])
        return m

    acc = chunk_max(0)
    for c in range(1, n_chunks):                                   # static trip count
        acc = jnp.maximum(acc, chunk_max(c))

    # Bias + ReLU after the max (valid because the BN scale is inside the matmul).
    o_ref[...] = jnp.maximum(acc + bias_ref[...], 0.0)


def pfn_layer(x, weight, gamma, beta, running_mean, running_var, *,
              eps=0.001, tile_p=1024, compute_dtype=jnp.bfloat16):
    """x: (P, N, C_in); weight: (C_out, C_in) (torch layout). Returns (P, C_out) f32."""
    P, N, C_in = x.shape
    C_out = weight.shape[0]

    # ---- Fold BN (inference mode) into the weight; bias applied post-max. ----
    scale = gamma / jnp.sqrt(running_var + eps)                       # (C_out,)
    bias2d = (beta - running_mean * scale).astype(jnp.float32).reshape(1, C_out)
    w_f = jnp.transpose(weight).astype(jnp.float32) * scale[None, :]  # (C_in, C_out)

    # ---- Point-chunking so each chunk occupies a 128-lane-aligned slab. ----
    if C_in <= 128:
        C_in_p = max(1, pl.next_power_of_2(C_in))   # divides 128
        nc = 128 // C_in_p                          # points per chunk
    else:
        C_in_p = _round_up(C_in, 128)
        nc = 1
    kw = nc * C_in_p                                # slab width (multiple of 128)
    N_p = _round_up(N, nc)
    n_chunks = N_p // nc

    # ---- Block-diagonal folded weight: one MXU call per chunk, no reshapes. ----
    w_pad = jnp.pad(w_f, ((0, C_in_p - C_in), (0, 0)))               # zero K rows
    w_bd = jnp.kron(jnp.eye(nc, dtype=w_pad.dtype), w_pad).astype(compute_dtype)

    # ---- Lane-dense packed input (P, N_p * C_in_p). ----
    xc = x.astype(compute_dtype)
    if C_in_p != C_in:
        xc = jnp.pad(xc, ((0, 0), (0, 0), (0, C_in_p - C_in)))        # zeros: no effect
    if N_p != N:
        xc = jnp.pad(xc, ((0, 0), (0, N_p - N), (0, 0)), mode="edge")  # dup: max-safe
    xc = xc.reshape(P, N_p * C_in_p)

    # ---- Pillar tiling (ragged P handled by padding, sliced off at the end). ----
    tp = min(tile_p, _round_up(max(P, 1), 8))
    tp = _round_up(tp, 8)
    P_pad = _round_up(P, tp)
    if P_pad != P:
        xc = jnp.pad(xc, ((0, P_pad - P), (0, 0)))
    grid = (P_pad // tp,)

    kernel = functools.partial(pfn_kernel, nc=nc, n_chunks=n_chunks)

    bytes_accessed = (xc.size * xc.dtype.itemsize
                      + w_bd.size * w_bd.dtype.itemsize
                      + bias2d.size * 4
                      + P_pad * C_out * 4)
    cost = pl.CostEstimate(flops=2 * P_pad * n_chunks * kw * nc * C_out,
                           transcendentals=0,
                           bytes_accessed=bytes_accessed)

    out = pl.pallas_call(
        kernel,
        out_shape=jax.ShapeDtypeStruct((P_pad, C_out), jnp.float32),
        grid_spec=pl.GridSpec(
            grid=grid,
            in_specs=[
                pl.BlockSpec((tp, N_p * C_in_p), lambda i: (i, 0)),
                pl.BlockSpec((kw, nc * C_out), lambda i: (0, 0)),
                pl.BlockSpec((1, C_out), lambda i: (0, 0)),
            ],
            out_specs=pl.BlockSpec((tp, C_out), lambda i: (i, 0)),
        ),
        compiler_params=pltpu.CompilerParams(
            dimension_semantics=("parallel",),
            # ~10 MiB actually needed at tile_p=1024; 48 MiB leaves headroom and
            # still fits v7x's 64 MiB physical VMEM (v5e/v6e have 128 MiB).
            vmem_limit_bytes=48 * 1024 * 1024,
        ),
        cost_estimate=cost,
    )(xc, w_bd, bias2d)
    return out[:P]


def pfn_layer_ref(x, weight, gamma, beta, running_mean, running_var, *, eps=0.001):
    y = jnp.einsum("pnc,oc->pno", x, weight)
    scale = gamma / jnp.sqrt(running_var + eps)
    bias = beta - running_mean * scale
    y = y * scale[None, None, :] + bias[None, None, :]
    y = jnp.maximum(y, 0.0)
    return jnp.max(y, axis=1)


def _make_inputs(key, P, N, C_in, C_out):
    kx, kw, kg, kb, km, kv = jax.random.split(key, 6)
    x = jax.random.normal(kx, (P, N, C_in), dtype=jnp.float32)
    weight = jax.random.normal(kw, (C_out, C_in), dtype=jnp.float32) * (1.0 / C_in ** 0.5)
    gamma = 1.0 + 0.1 * jax.random.normal(kg, (C_out,), dtype=jnp.float32)
    beta = 0.1 * jax.random.normal(kb, (C_out,), dtype=jnp.float32)
    running_mean = 0.05 * jax.random.normal(km, (C_out,), dtype=jnp.float32)
    running_var = 1.0 + 0.1 * jax.nn.softplus(
        jax.random.normal(kv, (C_out,), dtype=jnp.float32))
    return x, weight, gamma, beta, running_mean, running_var


if __name__ == "__main__":
    key = jax.random.PRNGKey(0)
    k1, k2 = jax.random.split(key)

    # Main config (P deliberately NOT a multiple of the tile: ragged-P path).
    configs = [
        (k1, 50, 32, 16, 128),
        # Odd shapes: C_in=9 -> zero-pad to 16, N=20 -> edge-pad to 24, C_out=64.
        (k2, 37, 20, 9, 64),
    ]

    for kk, P, N, C_in, C_out in configs:
        args = _make_inputs(kk, P, N, C_in, C_out)
        out = jax.block_until_ready(pfn_layer(*args))
        ref = pfn_layer_ref(*args)
        assert out.shape == (P, C_out)
        # Loose tolerance accounts for bf16 matmul inputs (f32 accumulation).
        assert jnp.allclose(out, ref, atol=5e-2, rtol=5e-2), float(
            jnp.max(jnp.abs(out - ref)))

    print("KERNEL_OK")
</pallas_src>

<mosaic_0001>
module attributes {stable_mosaic.version = 11 : i64} {
  func.func @pfn_kernel(%arg0: i32, %arg1: memref<56x512xbf16, #tpu.memory_space<vmem>>, %arg2: memref<128x1024xbf16, #tpu.memory_space<vmem>>, %arg3: memref<1x128xf32, #tpu.memory_space<vmem>>, %arg4: memref<56x128xf32, #tpu.memory_space<vmem>>) attributes {dimension_semantics = [#tpu.dimension_semantics<parallel>], iteration_bounds = array<i64: 1>, scalar_prefetch = 0 : i64, scratch_operands = 0 : i64, tpu.core_type = #tpu.core_type<tc>, window_params = [{transform_indices = @transform_0, window_bounds = array<i64: 56, 512>}, {pipeline_mode = #tpu.pipeline_mode<synchronous>, transform_indices = @transform_1, window_bounds = array<i64: 128, 1024>}, {pipeline_mode = #tpu.pipeline_mode<synchronous>, transform_indices = @transform_2, window_bounds = array<i64: 1, 128>}, {transform_indices = @transform_3, window_bounds = array<i64: 56, 128>}]} {
    %c0 = arith.constant 0 : index
    %c0_0 = arith.constant 0 : index
    %0 = vector.load %arg2[%c0, %c0_0] : memref<128x1024xbf16, #tpu.memory_space<vmem>>, vector<128x1024xbf16>
    %c0_1 = arith.constant 0 : index
    %c0_2 = arith.constant 0 : index
    %1 = vector.load %arg1[%c0_1, %c0_2] : memref<56x512xbf16, #tpu.memory_space<vmem>>, vector<56x128xbf16>
    %cst = arith.constant dense<0.000000e+00> : vector<56x1024xf32>
    %2 = tpu.matmul %1, %0, %cst {dimension_numbers = #tpu.dot_dimension_numbers<[1], [0], [0], [1], [0, 0, 1, 1], [], []>} : vector<56x128xbf16>, vector<128x1024xbf16>, vector<56x1024xf32> -> vector<56x1024xf32>
    %3 = vector.extract_strided_slice %2 {offsets = [0, 0], sizes = [56, 128], strides = [1, 1]} : vector<56x1024xf32> to vector<56x128xf32>
    %4 = vector.extract_strided_slice %2 {offsets = [0, 128], sizes = [56, 128], strides = [1, 1]} : vector<56x1024xf32> to vector<56x128xf32>
    %5 = arith.maximumf %3, %4 : vector<56x128xf32>
    %6 = vector.extract_strided_slice %2 {offsets = [0, 256], sizes = [56, 128], strides = [1, 1]} : vector<56x1024xf32> to vector<56x128xf32>
    %7 = arith.maximumf %5, %6 : vector<56x128xf32>
    %8 = vector.extract_strided_slice %2 {offsets = [0, 384], sizes = [56, 128], strides = [1, 1]} : vector<56x1024xf32> to vector<56x128xf32>
    %9 = arith.maximumf %7, %8 : vector<56x128xf32>
    %10 = vector.extract_strided_slice %2 {offsets = [0, 512], sizes = [56, 128], strides = [1, 1]} : vector<56x1024xf32> to vector<56x128xf32>
    %11 = arith.maximumf %9, %10 : vector<56x128xf32>
    %12 = vector.extract_strided_slice %2 {offsets = [0, 640], sizes = [56, 128], strides = [1, 1]} : vector<56x1024xf32> to vector<56x128xf32>
    %13 = arith.maximumf %11, %12 : vector<56x128xf32>
    %14 = vector.extract_strided_slice %2 {offsets = [0, 768], sizes = [56, 128], strides = [1, 1]} : vector<56x1024xf32> to vector<56x128xf32>
    %15 = arith.maximumf %13, %14 : vector<56x128xf32>
    %16 = vector.extract_strided_slice %2 {offsets = [0, 896], sizes = [56, 128], strides = [1, 1]} : vector<56x1024xf32> to vector<56x128xf32>
    %17 = arith.maximumf %15, %16 : vector<56x128xf32>
    %c0_3 = arith.constant 0 : index
    %c128 = arith.constant 128 : index
    %18 = vector.load %arg1[%c0_3, %c128] : memref<56x512xbf16, #tpu.memory_space<vmem>>, vector<56x128xbf16>
    %cst_4 = arith.constant dense<0.000000e+00> : vector<56x1024xf32>
    %19 = tpu.matmul %18, %0, %cst_4 {dimension_numbers = #tpu.dot_dimension_numbers<[1], [0], [0], [1], [0, 0, 1, 1], [], []>} : vector<56x128xbf16>, vector<128x1024xbf16>, vector<56x1024xf32> -> vector<56x1024xf32>
    %20 = vector.extract_strided_slice %19 {offsets = [0, 0], sizes = [56, 128], strides = [1, 1]} : vector<56x1024xf32> to vector<56x128xf32>
    %21 = vector.extract_strided_slice %19 {offsets = [0, 128], sizes = [56, 128], strides = [1, 1]} : vector<56x1024xf32> to vector<56x128xf32>
    %22 = arith.maximumf %20, %21 : vector<56x128xf32>
    %23 = vector.extract_strided_slice %19 {offsets = [0, 256], sizes = [56, 128], strides = [1, 1]} : vector<56x1024xf32> to vector<56x128xf32>
    %24 = arith.maximumf %22, %23 : vector<56x128xf32>
    %25 = vector.extract_strided_slice %19 {offsets = [0, 384], sizes = [56, 128], strides = [1, 1]} : vector<56x1024xf32> to vector<56x128xf32>
    %26 = arith.maximumf %24, %25 : vector<56x128xf32>
    %27 = vector.extract_strided_slice %19 {offsets = [0, 512], sizes = [56, 128], strides = [1, 1]} : vector<56x1024xf32> to vector<56x128xf32>
    %28 = arith.maximumf %26, %27 : vector<56x128xf32>
    %29 = vector.extract_strided_slice %19 {offsets = [0, 640], sizes = [56, 128], strides = [1, 1]} : vector<56x1024xf32> to vector<56x128xf32>
    %30 = arith.maximumf %28, %29 : vector<56x128xf32>
    %31 = vector.extract_strided_slice %19 {offsets = [0, 768], sizes = [56, 128], strides = [1, 1]} : vector<56x1024xf32> to vector<56x128xf32>
    %32 = arith.maximumf %30, %31 : vector<56x128xf32>
    %33 = vector.extract_strided_slice %19 {offsets = [0, 896], sizes = [56, 128], strides = [1, 1]} : vector<56x1024xf32> to vector<56x128xf32>
    %34 = arith.maximumf %32, %33 : vector<56x128xf32>
    %35 = arith.maximumf %17, %34 : vector<56x128xf32>
    %c0_5 = arith.constant 0 : index
    %c256 = arith.constant 256 : index
    %36 = vector.load %arg1[%c0_5, %c256] : memref<56x512xbf16, #tpu.memory_space<vmem>>, vector<56x128xbf16>
    %cst_6 = arith.constant dense<0.000000e+00> : vector<56x1024xf32>
    %37 = tpu.matmul %36, %0, %cst_6 {dimension_numbers = #tpu.dot_dimension_numbers<[1], [0], [0], [1], [0, 0, 1, 1], [], []>} : vector<56x128xbf16>, vector<128x1024xbf16>, vector<56x1024xf32> -> vector<56x1024xf32>
    %38 = vector.extract_strided_slice %37 {offsets = [0, 0], sizes = [56, 128], strides = [1, 1]} : vector<56x1024xf32> to vector<56x128xf32>
    %39 = vector.extract_strided_slice %37 {offsets = [0, 128], sizes = [56, 128], strides = [1, 1]} : vector<56x1024xf32> to vector<56x128xf32>
    %40 = arith.maximumf %38, %39 : vector<56x128xf32>
    %41 = vector.extract_strided_slice %37 {offsets = [0, 256], sizes = [56, 128], strides = [1, 1]} : vector<56x1024xf32> to vector<56x128xf32>
    %42 = arith.maximumf %40, %41 : vector<56x128xf32>
    %43 = vector.extract_strided_slice %37 {offsets = [0, 384], sizes = [56, 128], strides = [1, 1]} : vector<56x1024xf32> to vector<56x128xf32>
    %44 = arith.maximumf %42, %43 : vector<56x128xf32>
    %45 = vector.extract_strided_slice %37 {offsets = [0, 512], sizes = [56, 128], strides = [1, 1]} : vector<56x1024xf32> to vector<56x128xf32>
    %46 = arith.maximumf %44, %45 : vector<56x128xf32>
    %47 = vector.extract_strided_slice %37 {offsets = [0, 640], sizes = [56, 128], strides = [1, 1]} : vector<56x1024xf32> to vector<56x128xf32>
    %48 = arith.maximumf %46, %47 : vector<56x128xf32>
    %49 = vector.extract_strided_slice %37 {offsets = [0, 768], sizes = [56, 128], strides = [1, 1]} : vector<56x1024xf32> to vector<56x128xf32>
    %50 = arith.maximumf %48, %49 : vector<56x128xf32>
    %51 = vector.extract_strided_slice %37 {offsets = [0, 896], sizes = [56, 128], strides = [1, 1]} : vector<56x1024xf32> to vector<56x128xf32>
    %52 = arith.maximumf %50, %51 : vector<56x128xf32>
    %53 = arith.maximumf %35, %52 : vector<56x128xf32>
    %c0_7 = arith.constant 0 : index
    %c384 = arith.constant 384 : index
    %54 = vector.load %arg1[%c0_7, %c384] : memref<56x512xbf16, #tpu.memory_space<vmem>>, vector<56x128xbf16>
    %cst_8 = arith.constant dense<0.000000e+00> : vector<56x1024xf32>
    %55 = tpu.matmul %54, %0, %cst_8 {dimension_numbers = #tpu.dot_dimension_numbers<[1], [0], [0], [1], [0, 0, 1, 1], [], []>} : vector<56x128xbf16>, vector<128x1024xbf16>, vector<56x1024xf32> -> vector<56x1024xf32>
    %56 = vector.extract_strided_slice %55 {offsets = [0, 0], sizes = [56, 128], strides = [1, 1]} : vector<56x1024xf32> to vector<56x128xf32>
    %57 = vector.extract_strided_slice %55 {offsets = [0, 128], sizes = [56, 128], strides = [1, 1]} : vector<56x1024xf32> to vector<56x128xf32>
    %58 = arith.maximumf %56, %57 : vector<56x128xf32>
    %59 = vector.extract_strided_slice %55 {offsets = [0, 256], sizes = [56, 128], strides = [1, 1]} : vector<56x1024xf32> to vector<56x128xf32>
    %60 = arith.maximumf %58, %59 : vector<56x128xf32>
    %61 = vector.extract_strided_slice %55 {offsets = [0, 384], sizes = [56, 128], strides = [1, 1]} : vector<56x1024xf32> to vector<56x128xf32>
    %62 = arith.maximumf %60, %61 : vector<56x128xf32>
    %63 = vector.extract_strided_slice %55 {offsets = [0, 512], sizes = [56, 128], strides = [1, 1]} : vector<56x1024xf32> to vector<56x128xf32>
    %64 = arith.maximumf %62, %63 : vector<56x128xf32>
    %65 = vector.extract_strided_slice %55 {offsets = [0, 640], sizes = [56, 128], strides = [1, 1]} : vector<56x1024xf32> to vector<56x128xf32>
    %66 = arith.maximumf %64, %65 : vector<56x128xf32>
    %67 = vector.extract_strided_slice %55 {offsets = [0, 768], sizes = [56, 128], strides = [1, 1]} : vector<56x1024xf32> to vector<56x128xf32>
    %68 = arith.maximumf %66, %67 : vector<56x128xf32>
    %69 = vector.extract_strided_slice %55 {offsets = [0, 896], sizes = [56, 128], strides = [1, 1]} : vector<56x1024xf32> to vector<56x128xf32>
    %70 = arith.maximumf %68, %69 : vector<56x128xf32>
    %71 = arith.maximumf %53, %70 : vector<56x128xf32>
    %c0_9 = arith.constant 0 : index
    %c0_10 = arith.constant 0 : index
    %72 = vector.load %arg3[%c0_9, %c0_10] : memref<1x128xf32, #tpu.memory_space<vmem>>, vector<1x128xf32>
    %73 = vector.broadcast %72 : vector<1x128xf32> to vector<56x128xf32>
    %74 = arith.addf %71, %73 : vector<56x128xf32>
    %cst_11 = arith.constant 0.000000e+00 : f32
    %75 = vector.broadcast %cst_11 : f32 to vector<56x128xf32>
    %76 = arith.maximumf %74, %75 : vector<56x128xf32>
    %c0_12 = arith.constant 0 : index
    %c0_13 = arith.constant 0 : index
    %77 = vector.load %arg4[%c0_12, %c0_13] : memref<56x128xf32, #tpu.memory_space<vmem>>, vector<56x128xf32>
    tpu.vector_store %arg4[%c0_12, %c0_13], %76 {strides = array<i32>} : memref<56x128xf32, #tpu.memory_space<vmem>>, vector<56x128xf32>,
    return
  }
  func.func @transform_0(%arg0: i32) -> (i32, i32) {
    %c0_i32 = arith.constant 0 : i32
    %c0_i32_0 = arith.constant 0 : i32
    return %arg0, %c0_i32 : i32, i32
  }
  func.func @transform_1(%arg0: i32) -> (i32, i32) {
    %c0_i32 = arith.constant 0 : i32
    %c0_i32_0 = arith.constant 0 : i32
    %c0_i32_1 = arith.constant 0 : i32
    return %c0_i32, %c0_i32_0 : i32, i32
  }
  func.func @transform_2(%arg0: i32) -> (i32, i32) {
    %c0_i32 = arith.constant 0 : i32
    %c0_i32_0 = arith.constant 0 : i32
    %c0_i32_1 = arith.constant 0 : i32
    return %c0_i32, %c0_i32_0 : i32, i32
  }
  func.func @transform_3(%arg0: i32) -> (i32, i32) {
    %c0_i32 = arith.constant 0 : i32
    %c0_i32_0 = arith.constant 0 : i32
    return %arg0, %c0_i32 : i32, i32
  }
}

</mosaic_0001>

<bundles_post_ra>
// kernel: tpu_custom_call.1
= control target key start
LH: loop header
LB: loop body
LE: loop exit
PB: predicated region body
PF: predicated region fallthrough
CT: control target
= control target key end

     0   :  { %8 = vsyncpa [#allocation3], 0  ;;  %s2858_s0 = inlined_call_operand.hbm [shape: bf16[56,512], index: 0, kind: input, shape index: {}]   ;;  %s2859_s1 = inlined_call_operand.hbm [shape: bf16[128,1024], index: 1, kind: input, shape index: {}]   ;;  %s2860_s2 = inlined_call_operand.vmem [shape: f32[1,128], index: 2, kind: input, shape index: {}]   ;;  %s2861_s3 = inlined_call_operand.hbm [shape: f32[56,128], index: 3, kind: output, shape index: {}]  }
   0x1   :  { %9 = vsyncpa [#allocation6], 0 }
   0x2   :  { %10 = vsyncpa [#allocation4], 0  ;;  %s2122_s12 = smov [#allocation2]   ;;  %s2050_s16 = scalar_lea.hbm %s2858_s0, 1792 }
   0x3   :  { %s16_s13 = sshll.u32 %s2122_s12, 4  ;;  %p2051_p0 = scmp.ne.s32.totalorder %s2858_s0, %s2050_s16  ;;  %s17_s13 = int_to_ptr.vmem [resolvable:$true] %s16_s13 }
   0x4   :  { %p2054_p1 = scmp.lt.u32.totalorder %s2050_s16, %s2858_s0 }
   0x6   :  { %p2056_p2 = pnand %p2054_p1, %p2051_p0 }
   0x8   :  { %2059 = shalt.err (!%p2056_p2)
}
   0x9   :  { %s2060_s21 = scalar_lea.vmem %s17_s13, 1792  ;;  %p2065_p4 = scmp.lt.s32.totalorder %s17_s13, %s17_s13 }
   0xa   :  { %p2061_p3 = scmp.ne.s32.totalorder %s17_s13, %s2060_s21  ;;  %p2066_p5 = scmp.lt.s32.totalorder %s2060_s21, %s2060_s21 }
   0xc   :  { %p2067_p6 = por %p2066_p5, %p2065_p4 }
   0xe   :  { %p2068_p7 = pnand %p2067_p6, %p2061_p3 }
  0x10   :  { %2071 = shalt.err (!%p2068_p7)
}
  0x11   :  { %s2123_s22 = smov 256   ;;  %s2124_s23 = smov 16  }
  0x12   :  { %22 = dma.hbm_to_vmem [thread:$0]  %s2858_s0, 1792, %s17_s13, [#allocation3], %s2123_s22, %s2123_s22, %s2124_s23  }
  0x13   :  { %s2125_s26 = smov [#allocation5]   ;;  %s2072_s30 = scalar_lea.hbm %s2859_s1, 8192 }
  0x14   :  { %s28_s27 = sshll.u32 %s2125_s26, 4  ;;  %p2073_p8 = scmp.ne.s32.totalorder %s2859_s1, %s2072_s30  ;;  %s29_s27 = int_to_ptr.vmem [resolvable:$true] %s28_s27 }
  0x15   :  { %p2076_p9 = scmp.lt.u32.totalorder %s2072_s30, %s2859_s1 }
  0x17   :  { %p2078_p10 = pnand %p2076_p9, %p2073_p8 }
  0x19   :  { %2081 = shalt.err (!%p2078_p10)
}
  0x1a   :  { %s2082_s8 = scalar_lea.vmem %s29_s27, 8192  ;;  %p2087_p12 = scmp.lt.s32.totalorder %s29_s27, %s29_s27 }
  0x1b   :  { %p2083_p11 = scmp.ne.s32.totalorder %s29_s27, %s2082_s8  ;;  %p2088_p13 = scmp.lt.s32.totalorder %s2082_s8, %s2082_s8 }
  0x1d   :  { %p2089_p0 = por %p2088_p13, %p2087_p12 }
  0x1f   :  { %p2090_p1 = pnand %p2089_p0, %p2083_p11 }
  0x21   :  { %2093 = shalt.err (!%p2090_p1)
}
  0x22   :  { %s2126_s0 = smov 512   ;;  %s2127_s9 = smov 32  }
  0x23   :  { %34 = dma.hbm_to_vmem [thread:$0]  %s2859_s1, 8192, %s29_s27, [#allocation6], %s2126_s0, %s2126_s0, %s2127_s9  }
  0x24   :  { %2116 = dma.done.wait [#allocation3], 1792  }
  0x25   :  { %2117 = vsyncadd [#allocation3], 4294965504 }
  0x26   :  { %2118 = dma.done.wait [#allocation6], 8192  }
  0x27   :  { %2119 = vsyncadd [#allocation6], 4294959104  ;;  %v2868_v0 = vmov 0   ;;  %v44_v1 = vld [vmem:[#allocation5] sm:$0xff]  ;;  %v45_v3 = vld [vmem:[#allocation5 + $0x8] sm:$0xff] }
  0x28   :  { %489 = vmatprep.mubr.bf16.mxu0 %v2868_v0  ;;  %560 = vmatprep.mubr.bf16.mxu1 %v2868_v0  ;;  %v48_v2 = vld [vmem:[#allocation5 + $0x20] sm:$0xff]  ;;  %v49_v6 = vld [vmem:[#allocation5 + $0x28] sm:$0xff]  ;;  %v46_v60 = vld [vmem:[#allocation5 + $0x10] sm:$0xff] }
  0x29   :  { %v2178_v4 = vcombine.high %v44_v1, %v48_v2  ;;  %v2180_v5 = vcombine.low %v44_v1, %v48_v2  ;;  %v52_v7 = vld [vmem:[#allocation5 + $0x40] sm:$0xff]  ;;  %v2182_v9 = vcombine.high %v45_v3, %v49_v6  ;;  %v2184_v10 = vcombine.low %v45_v3, %v49_v6  ;;  %v53_v12 = vld [vmem:[#allocation5 + $0x48] sm:$0xff]  ;;  %v50_v63 = vld [vmem:[#allocation5 + $0x30] sm:$0xff] }
  0x2a   :  { %v56_v8 = vld [vmem:[#allocation5 + $0x60] sm:$0xff]  ;;  %v57_v13 = vld [vmem:[#allocation5 + $0x68] sm:$0xff]  ;;  %v47_v2 = vld [vmem:[#allocation5 + $0x18] sm:$0xff] }
  0x2b   :  { %v2186_v11 = vcombine.high %v52_v7, %v56_v8  ;;  %v60_v14 = vld [vmem:[#allocation5 + $0x80] sm:$0xff]  ;;  %457 = vmatprep.subr.bf16.mxu0 %v2178_v4  ;;  %v2189_v15 = vcombine.high %v53_v12, %v57_v13  ;;  %v61_v17 = vld [vmem:[#allocation5 + $0x88] sm:$0xff]  ;;  %528 = vmatprep.subr.bf16.mxu1 %v2182_v9  ;;  %v2193_v19 = vcombine.low %v52_v7, %v56_v8  ;;  %v51_v3 = vld [vmem:[#allocation5 + $0x38] sm:$0xff] }
  0x2c   :  { %v64_v16 = vld [vmem:[#allocation5 + $0xa0] sm:$0xff]  ;;  %v65_v18 = vld [vmem:[#allocation5 + $0xa8] sm:$0xff]  ;;  %458 = vmatpush1.bf16.msra.mxu0 %v2180_v5  ;;  %529 = vmatpush1.bf16.msra.mxu1 %v2184_v10  ;;  %v2197_v20 = vcombine.low %v53_v12, %v57_v13  ;;  %v54_v7 = vld [vmem:[#allocation5 + $0x50] sm:$0xff] }
  0x2d   :  { %459 = vmatprep.subr.bf16.mxu0 %v2186_v11  ;;  %v2199_v21 = vcombine.high %v60_v14, %v64_v16  ;;  %530 = vmatprep.subr.bf16.mxu1 %v2189_v15  ;;  %v2202_v22 = vcombine.high %v61_v17, %v65_v18  ;;  %v68_v23 = vld [vmem:[#allocation5 + $0xc0] sm:$0xff]  ;;  %v69_v25 = vld [vmem:[#allocation5 + $0xc8] sm:$0xff]  ;;  %v2205_v27 = vcombine.low %v60_v14, %v64_v16  ;;  %v58_v8 = vld [vmem:[#allocation5 + $0x70] sm:$0xff] }
  0x2e   :  { %v72_v24 = vld [vmem:[#allocation5 + $0xe0] sm:$0xff]  ;;  %v73_v26 = vld [vmem:[#allocation5 + $0xe8] sm:$0xff]  ;;  %v2209_v28 = vcombine.low %v61_v17, %v65_v18  ;;  %v2273_v14 = vcombine.high %v46_v60, %v50_v63  ;;  %v55_v16 = vld [vmem:[#allocation5 + $0x58] sm:$0xff]  ;;  %v2276_v18 = vcombine.high %v47_v2, %v51_v3 }
  0x2f   :  { %v2211_v29 = vcombine.high %v68_v23, %v72_v24  ;;  %v2214_v30 = vcombine.high %v69_v25, %v73_v26  ;;  %v76_v31 = vld [vmem:[#allocation5 + $0x100] sm:$0xff]  ;;  %v77_v33 = vld [vmem:[#allocation5 + $0x108] sm:$0xff]  ;;  %v2217_v35 = vcombine.low %v68_v23, %v72_v24  ;;  %v2221_v36 = vcombine.low %v69_v25, %v73_v26  ;;  %v59_v17 = vld [vmem:[#allocation5 + $0x78] sm:$0xff] }
  0x30   :  { %460 = vmatpush1.bf16.msra.mxu0 %v2193_v19  ;;  %531 = vmatpush1.bf16.msra.mxu1 %v2197_v20  ;;  %v80_v32 = vld [vmem:[#allocation5 + $0x120] sm:$0xff]  ;;  %v81_v34 = vld [vmem:[#allocation5 + $0x128] sm:$0xff]  ;;  %v2279_v23 = vcombine.low %v46_v60, %v50_v63  ;;  %v2283_v24 = vcombine.low %v47_v2, %v51_v3  ;;  %v2285_v25 = vcombine.high %v54_v7, %v58_v8  ;;  %v78_v63 = vld [vmem:[#allocation5 + $0x110] sm:$0xff] }
  0x31   :  { %461 = vmatprep.subr.bf16.mxu0 %v2199_v21  ;;  %532 = vmatprep.subr.bf16.mxu1 %v2202_v22  ;;  %v2223_v37 = vcombine.high %v76_v31, %v80_v32  ;;  %v84_v38 = vld [vmem:[#allocation5 + $0x140] sm:$0xff]  ;;  %v2226_v39 = vcombine.high %v77_v33, %v81_v34  ;;  %v85_v41 = vld [vmem:[#allocation5 + $0x148] sm:$0xff]  ;;  %v2229_v43 = vcombine.low %v76_v31, %v80_v32  ;;  %v62_v31 = vld [vmem:[#allocation5 + $0x90] sm:$0xff] }
  0x32   :  { %v88_v40 = vld [vmem:[#allocation5 + $0x160] sm:$0xff]  ;;  %v89_v42 = vld [vmem:[#allocation5 + $0x168] sm:$0xff]  ;;  %v2233_v44 = vcombine.low %v77_v33, %v81_v34  ;;  %2892 = vst [vmem:[#allocation11_spill] sm:$0xff] %v2279_v23  ;;  %2893 = vst [vmem:[#allocation12_spill] sm:$0xff] %v2283_v24  ;;  %v2288_v26 = vcombine.high %v55_v16, %v59_v17 }
  0x33   :  { %v2235_v45 = vcombine.high %v84_v38, %v88_v40  ;;  %v92_v46 = vld [vmem:[#allocation5 + $0x180] sm:$0xff]  ;;  %v2238_v47 = vcombine.high %v85_v41, %v89_v42  ;;  %v93_v49 = vld [vmem:[#allocation5 + $0x188] sm:$0xff]  ;;  %v2241_v51 = vcombine.low %v84_v38, %v88_v40  ;;  %v2245_v52 = vcombine.low %v85_v41, %v89_v42  ;;  %2894 = vst [vmem:[#allocation13_spill] sm:$0xff] %v2285_v25  ;;  %v66_v32 = vld [vmem:[#allocation5 + $0xb0] sm:$0xff] }
  0x34   :  { %462 = vmatpush1.bf16.msra.mxu0 %v2205_v27  ;;  %533 = vmatpush1.bf16.msra.mxu1 %v2209_v28  ;;  %v96_v48 = vld [vmem:[#allocation5 + $0x1a0] sm:$0xff]  ;;  %v97_v50 = vld [vmem:[#allocation5 + $0x1a8] sm:$0xff]  ;;  %2895 = vst [vmem:[#allocation14_spill] sm:$0xff] %v2288_v26  ;;  %v63_v33 = vld [vmem:[#allocation5 + $0x98] sm:$0xff]  ;;  %v2293_v38 = vcombine.low %v54_v7, %v58_v8  ;;  %v2297_v40 = vcombine.low %v55_v16, %v59_v17 }
  0x35   :  { %463 = vmatprep.subr.bf16.mxu0 %v2211_v29  ;;  %534 = vmatprep.subr.bf16.mxu1 %v2214_v30  ;;  %v2247_v53 = vcombine.high %v92_v46, %v96_v48  ;;  %v2250_v54 = vcombine.high %v93_v49, %v97_v50  ;;  %v100_v55 = vld [vmem:[#allocation5 + $0x1c0] sm:$0xff]  ;;  %v101_v57 = vld [vmem:[#allocation5 + $0x1c8] sm:$0xff]  ;;  %v2253_v59 = vcombine.low %v92_v46, %v96_v48  ;;  %v67_v34 = vld [vmem:[#allocation5 + $0xb8] sm:$0xff] }
  0x36   :  { %v104_v56 = vld [vmem:[#allocation5 + $0x1e0] sm:$0xff]  ;;  %v105_v58 = vld [vmem:[#allocation5 + $0x1e8] sm:$0xff]  ;;  %v2257_v61 = vcombine.low %v93_v49, %v97_v50  ;;  %v2299_v41 = vcombine.high %v62_v31, %v66_v32  ;;  %v2303_v42 = vcombine.high %v63_v33, %v67_v34  ;;  %v70_v46 = vld [vmem:[#allocation5 + $0xd0] sm:$0xff] }
  0x37   :  { %v2259_v62 = vcombine.high %v100_v55, %v104_v56  ;;  %v2262_v1 = vcombine.high %v101_v57, %v105_v58  ;;  %v2265_v6 = vcombine.low %v100_v55, %v104_v56  ;;  %v2269_v12 = vcombine.low %v101_v57, %v105_v58  ;;  %v2271_v13 = vld [vmem:[#allocation2] ss:$16 sps:$4 sm:$0xff]   ;;  %v71_v50 = vld [vmem:[#allocation5 + $0xd8] sm:$0xff] }
  0x38   :  { %464 = vmatpush1.bf16.msra.mxu0 %v2217_v35  ;;  %535 = vmatpush1.bf16.msra.mxu1 %v2221_v36  ;;  %2896 = vst [vmem:[#allocation15_spill] sm:$0xff] %v2303_v42  ;;  %v74_v48 = vld [vmem:[#allocation5 + $0xf0] sm:$0xff]  ;;  %v75_v55 = vld [vmem:[#allocation5 + $0xf8] sm:$0xff]  ;;  %v2309_v56 = vcombine.low %v62_v31, %v66_v32  ;;  %v2313_v57 = vcombine.low %v63_v33, %v67_v34 }
  0x39   :  { %465 = vmatprep.subr.bf16.mxu0 %v2223_v37  ;;  %536 = vmatprep.subr.bf16.mxu1 %v2226_v39  ;;  %v2305_v49 = vld [vmem:[#allocation2 + $0x20] ss:$16 sps:$4 sm:$0xff]   ;;  %v2315_v58 = vcombine.high %v70_v46, %v74_v48  ;;  %v2318_v60 = vcombine.high %v71_v50, %v75_v55  ;;  %v79_v3 = vld [vmem:[#allocation5 + $0x118] sm:$0xff]  ;;  %v2323_v8 = vcombine.low %v70_v46, %v74_v48 }
  0x3a   :  { %2897 = vst [vmem:[#allocation16_spill] sm:$0xff] %v2309_v56  ;;  %2898 = vst [vmem:[#allocation17_spill] sm:$0xff] %v2313_v57  ;;  %v82_v2 = vld [vmem:[#allocation5 + $0x130] sm:$0xff]  ;;  %v83_v7 = vld [vmem:[#allocation5 + $0x138] sm:$0xff]  ;;  %v2327_v16 = vcombine.low %v71_v50, %v75_v55 }
  0x3b   :  { %2899 = vst [vmem:[#allocation18_spill] sm:$0xff] %v2315_v58  ;;  %2900 = vst [vmem:[#allocation19_spill] sm:$0xff] %v2318_v60  ;;  %v2329_v17 = vcombine.high %v78_v63, %v82_v2  ;;  %v2333_v31 = vcombine.high %v79_v3, %v83_v7  ;;  %v86_v32 = vld [vmem:[#allocation5 + $0x150] sm:$0xff]  ;;  %v87_v46 = vld [vmem:[#allocation5 + $0x158] sm:$0xff]  ;;  %v2339_v50 = vcombine.low %v78_v63, %v82_v2 }
  0x3c   :  { %466 = vmatpush1.bf16.msra.mxu0 %v2229_v43  ;;  %537 = vmatpush1.bf16.msra.mxu1 %v2233_v44  ;;  %2901 = vst [vmem:[#allocation20_spill] sm:$0xff] %v2323_v8  ;;  %2902 = vst [vmem:[#allocation21_spill] sm:$0xff] %v2327_v16  ;;  %v90_v33 = vld [vmem:[#allocation5 + $0x170] sm:$0xff]  ;;  %v91_v48 = vld [vmem:[#allocation5 + $0x178] sm:$0xff]  ;;  %v2343_v55 = vcombine.low %v79_v3, %v83_v7  ;;  %v2908_v7 = vmov 0  }
  0x3d   :  { %467 = vmatprep.subr.bf16.mxu0 %v2235_v45  ;;  %538 = vmatprep.subr.bf16.mxu1 %v2238_v47  ;;  %2903 = vst [vmem:[#allocation22_spill] sm:$0xff] %v2329_v17  ;;  %2904 = vst [vmem:[#allocation23_spill] sm:$0xff] %v2333_v31  ;;  %v2335_v34 = vld [vmem:[#allocation2 + $0x40] ss:$16 sps:$4 sm:$0xff]   ;;  %v2353_v63 = vcombine.low %v86_v32, %v90_v33  ;;  %v2357_v2 = vcombine.low %v87_v46, %v91_v48 }
  0x3e   :  { %2905 = vst [vmem:[#allocation24_spill] sm:$0xff] %v2339_v50 }
  0x40   :  { %468 = vmatpush1.bf16.msra.mxu0 %v2241_v51  ;;  %539 = vmatpush1.bf16.msra.mxu1 %v2245_v52 }
  0x41   :  { %469 = vmatprep.subr.bf16.mxu0 %v2247_v53  ;;  %540 = vmatprep.subr.bf16.mxu1 %v2250_v54 }
  0x44   :  { %470 = vmatpush1.bf16.msra.mxu0 %v2253_v59  ;;  %541 = vmatpush1.bf16.msra.mxu1 %v2257_v61 }
  0x45   :  { %471 = vmatprep.subr.bf16.mxu0 %v2259_v62  ;;  %542 = vmatprep.subr.bf16.mxu1 %v2262_v1 }
  0x48   :  { %472 = vmatpush1.bf16.msra.mxu0 %v2265_v6  ;;  %543 = vmatpush1.bf16.msra.mxu1 %v2269_v12 }
  0x49   :  { %599 = vmatprep.subr.bf16.mxu0 %v2273_v14  ;;  %670 = vmatprep.subr.bf16.mxu1 %v2276_v18 }
  0x4b   :  { %490 = vmatmul.mubr.bf16.vlgmr.msra.gmra.mrb[0].mxu0 %v2271_v13  ;;  %561 = vmatmul.mubr.bf16.vlgmr.msra.gmra.mrb[0].mxu1 %v2271_v13 }
  0x4c   :  { %600 = vmatpush1.bf16.msra.mxu0 %v2279_v23  ;;  %671 = vmatpush1.bf16.msra.mxu1 %v2283_v24 }
  0x4d   :  { %601 = vmatprep.subr.bf16.mxu0 %v2285_v25  ;;  %672 = vmatprep.subr.bf16.mxu1 %v2288_v26 }
  0x4e   :  { %499 = vmatprep.mubr.bf16.mxu0 %v2868_v0  ;;  %570 = vmatprep.mubr.bf16.mxu1 %v2868_v0 }
  0x50   :  { %602 = vmatpush1.bf16.msra.mxu0 %v2293_v38  ;;  %673 = vmatpush1.bf16.msra.mxu1 %v2297_v40 }
  0x51   :  { %603 = vmatprep.subr.bf16.mxu0 %v2299_v41  ;;  %674 = vmatprep.subr.bf16.mxu1 %v2303_v42 }
  0x53   :  { %500 = vmatmul.mubr.bf16.gmra.mrb[4].mxu0 %v2305_v49  ;;  %571 = vmatmul.mubr.bf16.gmra.mrb[4].mxu1 %v2305_v49 }
  0x54   :  { %604 = vmatpush1.bf16.msra.mxu0 %v2309_v56  ;;  %675 = vmatpush1.bf16.msra.mxu1 %v2313_v57  ;;  %v94_v57 = vld [vmem:[#allocation5 + $0x190] sm:$0xff]  ;;  %v95_v56 = vld [vmem:[#allocation5 + $0x198] sm:$0xff] }
  0x55   :  { %605 = vmatprep.subr.bf16.mxu0 %v2315_v58  ;;  %676 = vmatprep.subr.bf16.mxu1 %v2318_v60  ;;  %v2345_v60 = vcombine.high %v86_v32, %v90_v33  ;;  %v2348_v58 = vcombine.high %v87_v46, %v91_v48  ;;  %v103_v32 = vld [vmem:[#allocation5 + $0x1d8] sm:$0xff] }
  0x56   :  { %509 = vmatprep.mubr.bf16.mxu0 %v2868_v0  ;;  %580 = vmatprep.mubr.bf16.mxu1 %v2868_v0  ;;  %v98_v0 = vld [vmem:[#allocation5 + $0x1b0] sm:$0xff]  ;;  %v107_v33 = vld [vmem:[#allocation5 + $0x1f8] sm:$0xff] }
  0x57   :  { %2906 = vst [vmem:[#allocation25_spill] sm:$0xff] %v2345_v60  ;;  %2907 = vst [vmem:[#allocation26_spill] sm:$0xff] %v2348_v58  ;;  %v2359_v3 = vcombine.high %v94_v57, %v98_v0  ;;  %v2369_v46 = vcombine.low %v94_v57, %v98_v0  ;;  %v2909_v57 = vld [vmem:[#allocation16_spill] sm:$0xff] }
  0x58   :  { %606 = vmatpush1.bf16.msra.mxu0 %v2323_v8  ;;  %677 = vmatpush1.bf16.msra.mxu1 %v2327_v16  ;;  %v99_v8 = vld [vmem:[#allocation5 + $0x1b8] sm:$0xff]  ;;  %v2365_v16 = vld [vmem:[#allocation2 + $0x60] ss:$0 sps:$4 sm:$0xff]  }
  0x59   :  { %607 = vmatprep.subr.bf16.mxu0 %v2329_v17  ;;  %678 = vmatprep.subr.bf16.mxu1 %v2333_v31  ;;  %v2363_v31 = vcombine.high %v95_v56, %v99_v8  ;;  %v102_v17 = vld [vmem:[#allocation5 + $0x1d0] sm:$0xff]  ;;  %v2373_v48 = vcombine.low %v95_v56, %v99_v8  ;;  %v2387_v56 = vcombine.low %v103_v32, %v107_v33  ;;  %v2910_v8 = vld [vmem:[#allocation17_spill] sm:$0xff] }
  0x5b   :  { %510 = vmatmul.mubr.bf16.gmra.mrb[8].mxu0 %v2335_v34  ;;  %581 = vmatmul.mubr.bf16.gmra.mrb[8].mxu1 %v2335_v34 }
  0x5c   :  { %608 = vmatpush1.bf16.msra.mxu0 %v2339_v50  ;;  %679 = vmatpush1.bf16.msra.mxu1 %v2343_v55  ;;  %v106_v50 = vld [vmem:[#allocation5 + $0x1f0] sm:$0xff] }
  0x5d   :  { %609 = vmatprep.subr.bf16.mxu0 %v2345_v60  ;;  %680 = vmatprep.subr.bf16.mxu1 %v2348_v58  ;;  %v2375_v58 = vcombine.high %v102_v17, %v106_v50  ;;  %v2378_v60 = vcombine.high %v103_v32, %v107_v33  ;;  %v2383_v0 = vcombine.low %v102_v17, %v106_v50  ;;  %v2912_v17 = vld [vmem:[#allocation19_spill] sm:$0xff]  ;;  %v2913_v50 = vld [vmem:[#allocation20_spill] sm:$0xff]  ;;  %v2914_v32 = vld [vmem:[#allocation21_spill] sm:$0xff] }
  0x5e   :  { %519 = vmatprep.mubr.bf16.mxu0 %v2908_v7  ;;  %590 = vmatprep.mubr.bf16.mxu1 %v2908_v7  ;;  %v2915_v33 = vld [vmem:[#allocation22_spill] sm:$0xff] }
  0x60   :  { %610 = vmatpush1.bf16.msra.mxu0 %v2353_v63  ;;  %681 = vmatpush1.bf16.msra.mxu1 %v2357_v2 }
  0x61   :  { %611 = vmatprep.subr.bf16.mxu0 %v2359_v3  ;;  %682 = vmatprep.subr.bf16.mxu1 %v2363_v31 }
  0x63   :  { %520 = vmatmul.mubr.bf16.gmra.mrb[12].mxu0 %v2365_v16  ;;  %591 = vmatmul.mubr.bf16.gmra.mrb[12].mxu1 %v2365_v16 }
  0x64   :  { %612 = vmatpush1.bf16.msra.mxu0 %v2369_v46  ;;  %683 = vmatpush1.bf16.msra.mxu1 %v2373_v48 }
  0x65   :  { %613 = vmatprep.subr.bf16.mxu0 %v2375_v58  ;;  %684 = vmatprep.subr.bf16.mxu1 %v2378_v60 }
  0x66   :  { %631 = vmatprep.mubr.bf16.mxu0 %v2908_v7  ;;  %702 = vmatprep.mubr.bf16.mxu1 %v2908_v7 }
  0x68   :  { %614 = vmatpush1.bf16.msra.mxu0 %v2383_v0  ;;  %685 = vmatpush1.bf16.msra.mxu1 %v2387_v56 }
  0x69   :  { %819 = vmatprep.subr.bf16.mxu0 %v2178_v4  ;;  %890 = vmatprep.subr.bf16.mxu1 %v2182_v9 }
  0x6b   :  { %632 = vmatmul.mubr.bf16.vlgmr.msra.gmra.mrb[16].mxu0 %v2271_v13  ;;  %703 = vmatmul.mubr.bf16.vlgmr.msra.gmra.mrb[16].mxu1 %v2271_v13  ;;  %v2038_v13 = vld [vmem:[#allocation2 + $0x4] ss:$16 sps:$4 sm:$0xff]  }
  0x6c   :  { %820 = vmatpush1.bf16.msra.mxu0 %v2180_v5  ;;  %891 = vmatpush1.bf16.msra.mxu1 %v2184_v10 }
  0x6d   :  { %821 = vmatprep.subr.bf16.mxu0 %v2186_v11  ;;  %892 = vmatprep.subr.bf16.mxu1 %v2189_v15 }
  0x6e   :  { %641 = vmatprep.mubr.bf16.mxu0 %v2908_v7  ;;  %712 = vmatprep.mubr.bf16.mxu1 %v2908_v7 }
  0x70   :  { %822 = vmatpush1.bf16.msra.mxu0 %v2193_v19  ;;  %893 = vmatpush1.bf16.msra.mxu1 %v2197_v20 }
  0x71   :  { %823 = vmatprep.subr.bf16.mxu0 %v2199_v21  ;;  %894 = vmatprep.subr.bf16.mxu1 %v2202_v22 }
  0x73   :  { %642 = vmatmul.mubr.bf16.gmra.mrb[20].mxu0 %v2305_v49  ;;  %713 = vmatmul.mubr.bf16.gmra.mrb[20].mxu1 %v2305_v49  ;;  %v2039_v49 = vld [vmem:[#allocation2 + $0x24] ss:$16 sps:$4 sm:$0xff]  }
  0x74   :  { %824 = vmatpush1.bf16.msra.mxu0 %v2205_v27  ;;  %895 = vmatpush1.bf16.msra.mxu1 %v2209_v28 }
  0x75   :  { %825 = vmatprep.subr.bf16.mxu0 %v2211_v29  ;;  %896 = vmatprep.subr.bf16.mxu1 %v2214_v30 }
  0x76   :  { %651 = vmatprep.mubr.bf16.mxu0 %v2908_v7  ;;  %722 = vmatprep.mubr.bf16.mxu1 %v2908_v7 }
  0x78   :  { %826 = vmatpush1.bf16.msra.mxu0 %v2217_v35  ;;  %897 = vmatpush1.bf16.msra.mxu1 %v2221_v36 }
  0x79   :  { %827 = vmatprep.subr.bf16.mxu0 %v2223_v37  ;;  %898 = vmatprep.subr.bf16.mxu1 %v2226_v39 }
  0x7b   :  { %652 = vmatmul.mubr.bf16.gmra.mrb[24].mxu0 %v2335_v34  ;;  %723 = vmatmul.mubr.bf16.gmra.mrb[24].mxu1 %v2335_v34  ;;  %v2040_v34 = vld [vmem:[#allocation2 + $0x44] ss:$16 sps:$4 sm:$0xff]  }
  0x7c   :  { %828 = vmatpush1.bf16.msra.mxu0 %v2229_v43  ;;  %899 = vmatpush1.bf16.msra.mxu1 %v2233_v44 }
  0x7d   :  { %829 = vmatprep.subr.bf16.mxu0 %v2235_v45  ;;  %900 = vmatprep.subr.bf16.mxu1 %v2238_v47 }
  0x7e   :  { %661 = vmatprep.mubr.bf16.mxu0 %v2908_v7  ;;  %732 = vmatprep.mubr.bf16.mxu1 %v2908_v7 }
  0x80   :  { %830 = vmatpush1.bf16.msra.mxu0 %v2241_v51  ;;  %901 = vmatpush1.bf16.msra.mxu1 %v2245_v52 }
  0x81   :  { %831 = vmatprep.subr.bf16.mxu0 %v2247_v53  ;;  %902 = vmatprep.subr.bf16.mxu1 %v2250_v54 }
  0x83   :  { %662 = vmatmul.mubr.bf16.gmra.mrb[28].mxu0 %v2365_v16  ;;  %733 = vmatmul.mubr.bf16.gmra.mrb[28].mxu1 %v2365_v16  ;;  %v2911_v16 = vld [vmem:[#allocation18_spill] sm:$0xff] }
  0x84   :  { %832 = vmatpush1.bf16.msra.mxu0 %v2253_v59  ;;  %903 = vmatpush1.bf16.msra.mxu1 %v2257_v61 }
  0x85   :  { %833 = vmatprep.subr.bf16.mxu0 %v2259_v62  ;;  %904 = vmatprep.subr.bf16.mxu1 %v2262_v1 }
  0x86   :  { %851 = vmatprep.mubr.bf16.mxu0 %v2908_v7  ;;  %922 = vmatprep.mubr.bf16.mxu1 %v2908_v7 }
  0x88   :  { %834 = vmatpush1.bf16.msra.mxu0 %v2265_v6  ;;  %905 = vmatpush1.bf16.msra.mxu1 %v2269_v12 }
  0x89   :  { %961 = vmatprep.subr.bf16.mxu0 %v2273_v14  ;;  %1032 = vmatprep.subr.bf16.mxu1 %v2276_v18 }
  0x8b   :  { %852 = vmatmul.mubr.bf16.vlgmr.msra.gmra.mrb[32].mxu0 %v2038_v13  ;;  %923 = vmatmul.mubr.bf16.vlgmr.msra.gmra.mrb[32].mxu1 %v2038_v13 }
  0x8c   :  { %962 = vmatpush1.bf16.msra.mxu0 %v2279_v23  ;;  %1033 = vmatpush1.bf16.msra.mxu1 %v2283_v24 }
  0x8d   :  { %963 = vmatprep.subr.bf16.mxu0 %v2285_v25  ;;  %1034 = vmatprep.subr.bf16.mxu1 %v2288_v26 }
  0x8e   :  { %861 = vmatprep.mubr.bf16.mxu0 %v2908_v7  ;;  %932 = vmatprep.mubr.bf16.mxu1 %v2908_v7 }
  0x90   :  { %964 = vmatpush1.bf16.msra.mxu0 %v2293_v38  ;;  %1035 = vmatpush1.bf16.msra.mxu1 %v2297_v40 }
  0x91   :  { %965 = vmatprep.subr.bf16.mxu0 %v2299_v41  ;;  %1036 = vmatprep.subr.bf16.mxu1 %v2303_v42  ;;  %v2916_v42 = vld [vmem:[#allocation23_spill] sm:$0xff] }
  0x93   :  { %862 = vmatmul.mubr.bf16.gmra.mrb[36].mxu0 %v2039_v49  ;;  %933 = vmatmul.mubr.bf16.gmra.mrb[36].mxu1 %v2039_v49 }
  0x94   :  { %966 = vmatpush1.bf16.msra.mxu0 %v2909_v57  ;;  %1037 = vmatpush1.bf16.msra.mxu1 %v2910_v8  ;;  %v2917_v57 = vld [vmem:[#allocation24_spill] sm:$0xff]  ;;  %v2041_v8 = vld [vmem:[#allocation2 + $0x64] ss:$0 sps:$4 sm:$0xff]  }
  0x95   :  { %967 = vmatprep.subr.bf16.mxu0 %v2911_v16  ;;  %1038 = vmatprep.subr.bf16.mxu1 %v2912_v17  ;;  %v2918_v17 = vld [vmem:[#allocation25_spill] sm:$0xff]  ;;  %v2919_v16 = vld [vmem:[#allocation26_spill] sm:$0xff] }
  0x96   :  { %871 = vmatprep.mubr.bf16.mxu0 %v2908_v7  ;;  %942 = vmatprep.mubr.bf16.mxu1 %v2908_v7 }
  0x98   :  { %968 = vmatpush1.bf16.msra.mxu0 %v2913_v50  ;;  %1039 = vmatpush1.bf16.msra.mxu1 %v2914_v32 }
  0x99   :  { %969 = vmatprep.subr.bf16.mxu0 %v2915_v33  ;;  %1040 = vmatprep.subr.bf16.mxu1 %v2916_v42 }
  0x9b   :  { %872 = vmatmul.mubr.bf16.gmra.mrb[40].mxu0 %v2040_v34  ;;  %943 = vmatmul.mubr.bf16.gmra.mrb[40].mxu1 %v2040_v34 }
  0x9c   :  { %970 = vmatpush1.bf16.msra.mxu0 %v2917_v57  ;;  %1041 = vmatpush1.bf16.msra.mxu1 %v2343_v55 }
  0x9d   :  { %971 = vmatprep.subr.bf16.mxu0 %v2918_v17  ;;  %1042 = vmatprep.subr.bf16.mxu1 %v2919_v16 }
  0x9e   :  { %881 = vmatprep.mubr.bf16.mxu0 %v2908_v7  ;;  %952 = vmatprep.mubr.bf16.mxu1 %v2908_v7 }
  0xa0   :  { %972 = vmatpush1.bf16.msra.mxu0 %v2353_v63  ;;  %1043 = vmatpush1.bf16.msra.mxu1 %v2357_v2 }
  0xa1   :  { %973 = vmatprep.subr.bf16.mxu0 %v2359_v3  ;;  %1044 = vmatprep.subr.bf16.mxu1 %v2363_v31 }
  0xa3   :  { %882 = vmatmul.mubr.bf16.gmra.mrb[44].mxu0 %v2041_v8  ;;  %953 = vmatmul.mubr.bf16.gmra.mrb[44].mxu1 %v2041_v8 }
  0xa4   :  { %974 = vmatpush1.bf16.msra.mxu0 %v2369_v46  ;;  %1045 = vmatpush1.bf16.msra.mxu1 %v2373_v48 }
  0xa5   :  { %975 = vmatprep.subr.bf16.mxu0 %v2375_v58  ;;  %1046 = vmatprep.subr.bf16.mxu1 %v2378_v60 }
  0xa6   :  { %993 = vmatprep.mubr.bf16.mxu0 %v2908_v7  ;;  %1064 = vmatprep.mubr.bf16.mxu1 %v2908_v7 }
  0xa8   :  { %976 = vmatpush1.bf16.msra.mxu0 %v2383_v0  ;;  %1047 = vmatpush1.bf16.msra.mxu1 %v2387_v56 }
  0xa9   :  { %1188 = vmatprep.subr.bf16.mxu0 %v2178_v4  ;;  %1259 = vmatprep.subr.bf16.mxu1 %v2182_v9 }
  0xab   :  { %994 = vmatmul.mubr.bf16.vlgmr.msra.gmra.mrb[48].mxu0 %v2038_v13  ;;  %1065 = vmatmul.mubr.bf16.vlgmr.msra.gmra.mrb[48].mxu1 %v2038_v13  ;;  %v2042_v13 = vld [vmem:[#allocation2 + $0x8] ss:$16 sps:$4 sm:$0xff]  }
  0xac   :  { %1189 = vmatpush1.bf16.msra.mxu0 %v2180_v5  ;;  %1260 = vmatpush1.bf16.msra.mxu1 %v2184_v10 }
  0xad   :  { %1190 = vmatprep.subr.bf16.mxu0 %v2186_v11  ;;  %1261 = vmatprep.subr.bf16.mxu1 %v2189_v15 }
  0xae   :  { %1003 = vmatprep.mubr.bf16.mxu0 %v2908_v7  ;;  %1074 = vmatprep.mubr.bf16.mxu1 %v2908_v7 }
  0xb0   :  { %1191 = vmatpush1.bf16.msra.mxu0 %v2193_v19  ;;  %1262 = vmatpush1.bf16.msra.mxu1 %v2197_v20 }
  0xb1   :  { %1192 = vmatprep.subr.bf16.mxu0 %v2199_v21  ;;  %1263 = vmatprep.subr.bf16.mxu1 %v2202_v22 }
  0xb3   :  { %1004 = vmatmul.mubr.bf16.gmra.mrb[52].mxu0 %v2039_v49  ;;  %1075 = vmatmul.mubr.bf16.gmra.mrb[52].mxu1 %v2039_v49  ;;  %v2043_v49 = vld [vmem:[#allocation2 + $0x28] ss:$16 sps:$4 sm:$0xff]  }
  0xb4   :  { %1193 = vmatpush1.bf16.msra.mxu0 %v2205_v27  ;;  %1264 = vmatpush1.bf16.msra.mxu1 %v2209_v28 }
  0xb5   :  { %1194 = vmatprep.subr.bf16.mxu0 %v2211_v29  ;;  %1265 = vmatprep.subr.bf16.mxu1 %v2214_v30 }
  0xb6   :  { %1013 = vmatprep.mubr.bf16.mxu0 %v2908_v7  ;;  %1084 = vmatprep.mubr.bf16.mxu1 %v2908_v7 }
  0xb8   :  { %1195 = vmatpush1.bf16.msra.mxu0 %v2217_v35  ;;  %1266 = vmatpush1.bf16.msra.mxu1 %v2221_v36 }
  0xb9   :  { %1196 = vmatprep.subr.bf16.mxu0 %v2223_v37  ;;  %1267 = vmatprep.subr.bf16.mxu1 %v2226_v39 }
  0xbb   :  { %1014 = vmatmul.mubr.bf16.gmra.mrb[56].mxu0 %v2040_v34  ;;  %1085 = vmatmul.mubr.bf16.gmra.mrb[56].mxu1 %v2040_v34  ;;  %v2921_v34 = vld [vmem:[#allocation16_spill] sm:$0xff] }
  0xbc   :  { %1197 = vmatpush1.bf16.msra.mxu0 %v2229_v43  ;;  %1268 = vmatpush1.bf16.msra.mxu1 %v2233_v44 }
  0xbd   :  { %1198 = vmatprep.subr.bf16.mxu0 %v2235_v45  ;;  %1269 = vmatprep.subr.bf16.mxu1 %v2238_v47 }
  0xbe   :  { %1023 = vmatprep.mubr.bf16.mxu0 %v2908_v7  ;;  %1094 = vmatprep.mubr.bf16.mxu1 %v2908_v7 }
  0xc0   :  { %1199 = vmatpush1.bf16.msra.mxu0 %v2241_v51  ;;  %1270 = vmatpush1.bf16.msra.mxu1 %v2245_v52 }
  0xc1   :  { %1200 = vmatprep.subr.bf16.mxu0 %v2247_v53  ;;  %1271 = vmatprep.subr.bf16.mxu1 %v2250_v54 }
  0xc3   :  { %1024 = vmatmul.mubr.bf16.gmra.mrb[60].mxu0 %v2041_v8  ;;  %1095 = vmatmul.mubr.bf16.gmra.mrb[60].mxu1 %v2041_v8  ;;  %v2920_v8 = vld [vmem:[#allocation15_spill] sm:$0xff] }
  0xc4   :  { %1201 = vmatpush1.bf16.msra.mxu0 %v2253_v59  ;;  %1272 = vmatpush1.bf16.msra.mxu1 %v2257_v61 }
  0xc5   :  { %1202 = vmatprep.subr.bf16.mxu0 %v2259_v62  ;;  %1273 = vmatprep.subr.bf16.mxu1 %v2262_v1 }
  0xc6   :  { %1220 = vmatprep.mubr.bf16.mxu0 %v2908_v7  ;;  %1291 = vmatprep.mubr.bf16.mxu1 %v2908_v7 }
  0xc8   :  { %1203 = vmatpush1.bf16.msra.mxu0 %v2265_v6  ;;  %1274 = vmatpush1.bf16.msra.mxu1 %v2269_v12 }
  0xc9   :  { %1330 = vmatprep.subr.bf16.mxu0 %v2273_v14  ;;  %1401 = vmatprep.subr.bf16.mxu1 %v2276_v18 }
  0xcb   :  { %1221 = vmatmul.mubr.bf16.vlgmr.msra.gmra.mrb[64].mxu0 %v2042_v13  ;;  %1292 = vmatmul.mubr.bf16.vlgmr.msra.gmra.mrb[64].mxu1 %v2042_v13 }
  0xcc   :  { %1331 = vmatpush1.bf16.msra.mxu0 %v2279_v23  ;;  %1402 = vmatpush1.bf16.msra.mxu1 %v2283_v24  ;;  %v2924_v24 = vld [vmem:[#allocation19_spill] sm:$0xff] }
  0xcd   :  { %1332 = vmatprep.subr.bf16.mxu0 %v2285_v25  ;;  %1403 = vmatprep.subr.bf16.mxu1 %v2288_v26  ;;  %v2922_v25 = vld [vmem:[#allocation17_spill] sm:$0xff]  ;;  %v2923_v26 = vld [vmem:[#allocation18_spill] sm:$0xff] }
  0xce   :  { %1230 = vmatprep.mubr.bf16.mxu0 %v2908_v7  ;;  %1301 = vmatprep.mubr.bf16.mxu1 %v2908_v7  ;;  %v2044_v23 = vld [vmem:[#allocation2 + $0x48] ss:$16 sps:$4 sm:$0xff]  }
  0xd0   :  { %1333 = vmatpush1.bf16.msra.mxu0 %v2293_v38  ;;  %1404 = vmatpush1.bf16.msra.mxu1 %v2297_v40 }
  0xd1   :  { %1334 = vmatprep.subr.bf16.mxu0 %v2299_v41  ;;  %1405 = vmatprep.subr.bf16.mxu1 %v2920_v8 }
  0xd3   :  { %1231 = vmatmul.mubr.bf16.gmra.mrb[68].mxu0 %v2043_v49  ;;  %1302 = vmatmul.mubr.bf16.gmra.mrb[68].mxu1 %v2043_v49 }
  0xd4   :  { %1335 = vmatpush1.bf16.msra.mxu0 %v2921_v34  ;;  %1406 = vmatpush1.bf16.msra.mxu1 %v2922_v25 }
  0xd5   :  { %1336 = vmatprep.subr.bf16.mxu0 %v2923_v26  ;;  %1407 = vmatprep.subr.bf16.mxu1 %v2924_v24  ;;  %v2045_v24 = vld [vmem:[#allocation2 + $0x68] ss:$0 sps:$4 sm:$0xff]  }
  0xd6   :  { %1240 = vmatprep.mubr.bf16.mxu0 %v2908_v7  ;;  %1311 = vmatprep.mubr.bf16.mxu1 %v2908_v7 }
  0xd8   :  { %1337 = vmatpush1.bf16.msra.mxu0 %v2913_v50  ;;  %1408 = vmatpush1.bf16.msra.mxu1 %v2914_v32 }
  0xd9   :  { %1338 = vmatprep.subr.bf16.mxu0 %v2915_v33  ;;  %1409 = vmatprep.subr.bf16.mxu1 %v2916_v42 }
  0xdb   :  { %1241 = vmatmul.mubr.bf16.gmra.mrb[72].mxu0 %v2044_v23  ;;  %1312 = vmatmul.mubr.bf16.gmra.mrb[72].mxu1 %v2044_v23 }
  0xdc   :  { %1339 = vmatpush1.bf16.msra.mxu0 %v2917_v57  ;;  %1410 = vmatpush1.bf16.msra.mxu1 %v2343_v55 }
  0xdd   :  { %1340 = vmatprep.subr.bf16.mxu0 %v2918_v17  ;;  %1411 = vmatprep.subr.bf16.mxu1 %v2919_v16 }
  0xde   :  { %1250 = vmatprep.mubr.bf16.mxu0 %v2908_v7  ;;  %1321 = vmatprep.mubr.bf16.mxu1 %v2908_v7 }
  0xe0   :  { %1341 = vmatpush1.bf16.msra.mxu0 %v2353_v63  ;;  %1412 = vmatpush1.bf16.msra.mxu1 %v2357_v2 }
  0xe1   :  { %1342 = vmatprep.subr.bf16.mxu0 %v2359_v3  ;;  %1413 = vmatprep.subr.bf16.mxu1 %v2363_v31 }
  0xe3   :  { %1251 = vmatmul.mubr.bf16.gmra.mrb[76].mxu0 %v2045_v24  ;;  %1322 = vmatmul.mubr.bf16.gmra.mrb[76].mxu1 %v2045_v24 }
  0xe4   :  { %1343 = vmatpush1.bf16.msra.mxu0 %v2369_v46  ;;  %1414 = vmatpush1.bf16.msra.mxu1 %v2373_v48 }
  0xe5   :  { %1344 = vmatprep.subr.bf16.mxu0 %v2375_v58  ;;  %1415 = vmatprep.subr.bf16.mxu1 %v2378_v60 }
  0xe6   :  { %1362 = vmatprep.mubr.bf16.mxu0 %v2908_v7  ;;  %1433 = vmatprep.mubr.bf16.mxu1 %v2908_v7 }
  0xe8   :  { %1345 = vmatpush1.bf16.msra.mxu0 %v2383_v0  ;;  %1416 = vmatpush1.bf16.msra.mxu1 %v2387_v56 }
  0xe9   :  { %1557 = vmatprep.subr.bf16.mxu0 %v2178_v4  ;;  %1628 = vmatprep.subr.bf16.mxu1 %v2182_v9  ;;  %v2599_v4 = vld [vmem:[#allocation2 + $0xc] ss:$16 sps:$4 sm:$0xff]   ;;  %v2926_v9 = vld [vmem:[#allocation12_spill] sm:$0xff] }
  0xeb   :  { %1363 = vmatmul.mubr.bf16.vlgmr.msra.gmra.mrb[80].mxu0 %v2042_v13  ;;  %1434 = vmatmul.mubr.bf16.vlgmr.msra.gmra.mrb[80].mxu1 %v2042_v13 }
  0xec   :  { %1558 = vmatpush1.bf16.msra.mxu0 %v2180_v5  ;;  %1629 = vmatpush1.bf16.msra.mxu1 %v2184_v10  ;;  %v2925_v5 = vld [vmem:[#allocation11_spill] sm:$0xff]  ;;  %v2927_v10 = vld [vmem:[#allocation13_spill] sm:$0xff] }
  0xed   :  { %1559 = vmatprep.subr.bf16.mxu0 %v2186_v11  ;;  %1630 = vmatprep.subr.bf16.mxu1 %v2189_v15  ;;  %v2928_v11 = vld [vmem:[#allocation14_spill] sm:$0xff]  ;;  %v2613_v15 = vld [vmem:[#allocation2 + $0x2c] ss:$16 sps:$4 sm:$0xff]  }
  0xee   :  { %1372 = vmatprep.mubr.bf16.mxu0 %v2908_v7  ;;  %1443 = vmatprep.mubr.bf16.mxu1 %v2908_v7 }
  0xf0   :  { %1560 = vmatpush1.bf16.msra.mxu0 %v2193_v19  ;;  %1631 = vmatpush1.bf16.msra.mxu1 %v2197_v20  ;;  %v2929_v19 = vld [vmem:[#allocation19_spill] sm:$0xff] }
  0xf1   :  { %1561 = vmatprep.subr.bf16.mxu0 %v2199_v21  ;;  %1632 = vmatprep.subr.bf16.mxu1 %v2202_v22  ;;  %v2627_v20 = vld [vmem:[#allocation2 + $0x4c] ss:$16 sps:$4 sm:$0xff]  }
  0xf3   :  { %1373 = vmatmul.mubr.bf16.gmra.mrb[84].mxu0 %v2043_v49  ;;  %1444 = vmatmul.mubr.bf16.gmra.mrb[84].mxu1 %v2043_v49 }
  0xf4   :  { %1562 = vmatpush1.bf16.msra.mxu0 %v2205_v27  ;;  %1633 = vmatpush1.bf16.msra.mxu1 %v2209_v28  ;;  %v2641_v28 = vld [vmem:[#allocation2 + $0x6c] ss:$0 sps:$4 sm:$0xff]  }
  0xf5   :  { %1563 = vmatprep.subr.bf16.mxu0 %v2211_v29  ;;  %1634 = vmatprep.subr.bf16.mxu1 %v2214_v30 }
  0xf6   :  { %1382 = vmatprep.mubr.bf16.mxu0 %v2908_v7  ;;  %1453 = vmatprep.mubr.bf16.mxu1 %v2908_v7 }
  0xf8   :  { %1564 = vmatpush1.bf16.msra.mxu0 %v2217_v35  ;;  %1635 = vmatpush1.bf16.msra.mxu1 %v2221_v36 }
  0xf9   :  { %1565 = vmatprep.subr.bf16.mxu0 %v2223_v37  ;;  %1636 = vmatprep.subr.bf16.mxu1 %v2226_v39 }
  0xfb   :  { %1383 = vmatmul.mubr.bf16.gmra.mrb[88].mxu0 %v2044_v23  ;;  %1454 = vmatmul.mubr.bf16.gmra.mrb[88].mxu1 %v2044_v23 }
  0xfc   :  { %1566 = vmatpush1.bf16.msra.mxu0 %v2229_v43  ;;  %1637 = vmatpush1.bf16.msra.mxu1 %v2233_v44 }
  0xfd   :  { %1567 = vmatprep.subr.bf16.mxu0 %v2235_v45  ;;  %1638 = vmatprep.subr.bf16.mxu1 %v2238_v47 }
  0xfe   :  { %1392 = vmatprep.mubr.bf16.mxu0 %v2908_v7  ;;  %1463 = vmatprep.mubr.bf16.mxu1 %v2908_v7 }
 0x100   :  { %1568 = vmatpush1.bf16.msra.mxu0 %v2241_v51  ;;  %1639 = vmatpush1.bf16.msra.mxu1 %v2245_v52 }
 0x101   :  { %1569 = vmatprep.subr.bf16.mxu0 %v2247_v53  ;;  %1640 = vmatprep.subr.bf16.mxu1 %v2250_v54 }
 0x103   :  { %1393 = vmatmul.mubr.bf16.gmra.mrb[92].mxu0 %v2045_v24  ;;  %1464 = vmatmul.mubr.bf16.gmra.mrb[92].mxu1 %v2045_v24 }
 0x104   :  { %1570 = vmatpush1.bf16.msra.mxu0 %v2253_v59  ;;  %1641 = vmatpush1.bf16.msra.mxu1 %v2257_v61 }
 0x105   :  { %1571 = vmatprep.subr.bf16.mxu0 %v2259_v62  ;;  %1642 = vmatprep.subr.bf16.mxu1 %v2262_v1 }
 0x106   :  { %1589 = vmatprep.mubr.bf16.mxu0 %v2908_v7  ;;  %1660 = vmatprep.mubr.bf16.mxu1 %v2908_v7 }
 0x108   :  { %1572 = vmatpush1.bf16.msra.mxu0 %v2265_v6  ;;  %1643 = vmatpush1.bf16.msra.mxu1 %v2269_v12 }
 0x109   :  { %1699 = vmatprep.subr.bf16.mxu0 %v2273_v14  ;;  %1770 = vmatprep.subr.bf16.mxu1 %v2276_v18 }
 0x10b   :  { %1590 = vmatmul.mubr.bf16.vlgmr.msra.gmra.mrb[96].mxu0 %v2599_v4  ;;  %1661 = vmatmul.mubr.bf16.vlgmr.msra.gmra.mrb[96].mxu1 %v2599_v4 }
 0x10c   :  { %1700 = vmatpush1.bf16.msra.mxu0 %v2925_v5  ;;  %1771 = vmatpush1.bf16.msra.mxu1 %v2926_v9 }
 0x10d   :  { %1701 = vmatprep.subr.bf16.mxu0 %v2927_v10  ;;  %1772 = vmatprep.subr.bf16.mxu1 %v2928_v11 }
 0x10e   :  { %1599 = vmatprep.mubr.bf16.mxu0 %v2908_v7  ;;  %1670 = vmatprep.mubr.bf16.mxu1 %v2908_v7 }
 0x110   :  { %1702 = vmatpush1.bf16.msra.mxu0 %v2293_v38  ;;  %1773 = vmatpush1.bf16.msra.mxu1 %v2297_v40 }
 0x111   :  { %1703 = vmatprep.subr.bf16.mxu0 %v2299_v41  ;;  %1774 = vmatprep.subr.bf16.mxu1 %v2920_v8 }
 0x113   :  { %1600 = vmatmul.mubr.bf16.gmra.mrb[100].mxu0 %v2613_v15  ;;  %1671 = vmatmul.mubr.bf16.gmra.mrb[100].mxu1 %v2613_v15 }
 0x114   :  { %1704 = vmatpush1.bf16.msra.mxu0 %v2921_v34  ;;  %1775 = vmatpush1.bf16.msra.mxu1 %v2922_v25 }
 0x115   :  { %1705 = vmatprep.subr.bf16.mxu0 %v2923_v26  ;;  %1776 = vmatprep.subr.bf16.mxu1 %v2929_v19 }
 0x116   :  { %1609 = vmatprep.mubr.bf16.mxu0 %v2908_v7  ;;  %1680 = vmatprep.mubr.bf16.mxu1 %v2908_v7 }
 0x118   :  { %1706 = vmatpush1.bf16.msra.mxu0 %v2913_v50  ;;  %1777 = vmatpush1.bf16.msra.mxu1 %v2914_v32 }
 0x119   :  { %1707 = vmatprep.subr.bf16.mxu0 %v2915_v33  ;;  %1778 = vmatprep.subr.bf16.mxu1 %v2916_v42 }
 0x11b   :  { %1610 = vmatmul.mubr.bf16.gmra.mrb[104].mxu0 %v2627_v20  ;;  %1681 = vmatmul.mubr.bf16.gmra.mrb[104].mxu1 %v2627_v20 }
 0x11c   :  { %1708 = vmatpush1.bf16.msra.mxu0 %v2917_v57  ;;  %1779 = vmatpush1.bf16.msra.mxu1 %v2343_v55 }
 0x11d   :  { %1709 = vmatprep.subr.bf16.mxu0 %v2918_v17  ;;  %1780 = vmatprep.subr.bf16.mxu1 %v2919_v16 }
 0x11e   :  { %v491_v21 = vpop.f32.mrb[0].mxu0  ;;  %1619 = vmatprep.mubr.bf16.mxu0 %v2908_v7  ;;  %v562_v27 = vpop.f32.mrb[0].mxu1  ;;  %1690 = vmatprep.mubr.bf16.mxu1 %v2908_v7 }
 0x11f   :  { %v493_v22 = vpop.f32.mrb[1].mxu0  ;;  %v2645_v35 = vpop.f32.mrb[1].mxu1 }
 0x120   :  { %v741_v29 = vmax.f32 %v491_v21, %v493_v22  ;;  %v495_v30 = vpop.f32.mrb[2].mxu0  ;;  %1710 = vmatpush1.bf16.msra.mxu0 %v2353_v63  ;;  %v566_v37 = vpop.f32.mrb[2].mxu1  ;;  %1781 = vmatpush1.bf16.msra.mxu1 %v2357_v2 }
 0x121   :  { %v497_v36 = vpop.f32.mrb[3].mxu0  ;;  %1711 = vmatprep.subr.bf16.mxu0 %v2359_v3  ;;  %v2651_v44 = vpop.f32.mrb[3].mxu1  ;;  %1782 = vmatprep.subr.bf16.mxu1 %v2363_v31 }
 0x122   :  { %v2649_v39 = vmax.f32 %v741_v29, %v562_v27  ;;  %v742_v43 = vmax.f32 %v495_v30, %v497_v36 }
 0x123   :  { %1620 = vmatmul.mubr.bf16.gmra.mrb[108].mxu0 %v2641_v28  ;;  %1691 = vmatmul.mubr.bf16.gmra.mrb[108].mxu1 %v2641_v28 }
 0x124   :  { %v755_v45 = vmax.f32 %v2649_v39, %v2645_v35  ;;  %v2657_v47 = vmax.f32 %v742_v43, %v566_v37  ;;  %1712 = vmatpush1.bf16.msra.mxu0 %v2369_v46  ;;  %1783 = vmatpush1.bf16.msra.mxu1 %v2373_v48 }
 0x125   :  { %1713 = vmatprep.subr.bf16.mxu0 %v2375_v58  ;;  %1784 = vmatprep.subr.bf16.mxu1 %v2378_v60 }
 0x126   :  { %v756_v51 = vmax.f32 %v2657_v47, %v2651_v44  ;;  %v501_v52 = vpop.f32.mrb[4].mxu0  ;;  %1731 = vmatprep.mubr.bf16.mxu0 %v2908_v7  ;;  %v572_v54 = vpop.f32.mrb[4].mxu1  ;;  %1802 = vmatprep.mubr.bf16.mxu1 %v2908_v7 }
 0x127   :  { %v503_v53 = vpop.f32.mrb[5].mxu0  ;;  %v2669_v62 = vpop.f32.mrb[5].mxu1 }
 0x128   :  { %v743_v59 = vmax.f32 %v501_v52, %v503_v53  ;;  %v505_v61 = vpop.f32.mrb[6].mxu0  ;;  %1714 = vmatpush1.bf16.msra.mxu0 %v2383_v0  ;;  %v576_v6 = vpop.f32.mrb[6].mxu1  ;;  %1785 = vmatpush1.bf16.msra.mxu1 %v2387_v56 }
 0x129   :  { %v507_v1 = vpop.f32.mrb[7].mxu0  ;;  %v2674_v18 = vpop.f32.mrb[7].mxu1 }
 0x12a   :  { %v2672_v12 = vmax.f32 %v743_v59, %v572_v54  ;;  %v744_v14 = vmax.f32 %v505_v61, %v507_v1 }
 0x12b   :  { %1732 = vmatmul.mubr.bf16.vlgmr.msra.gmra.mrb[112].mxu0 %v2599_v4  ;;  %1803 = vmatmul.mubr.bf16.vlgmr.msra.gmra.mrb[112].mxu1 %v2599_v4 }
 0x12c   :  { %v757_v23 = vmax.f32 %v2672_v12, %v2669_v62  ;;  %v2679_v24 = vmax.f32 %v744_v14, %v576_v6  ;;  %1741 = vmatprep.mubr.bf16.mxu0 %v2908_v7  ;;  %1812 = vmatprep.mubr.bf16.mxu1 %v2908_v7 }
 0x12e   :  { %v758_v25 = vmax.f32 %v2679_v24, %v2674_v18  ;;  %v511_v26 = vpop.f32.mrb[8].mxu0  ;;  %v582_v40 = vpop.f32.mrb[8].mxu1 }
 0x12f   :  { %v513_v38 = vpop.f32.mrb[9].mxu0  ;;  %v2686_v58 = vpop.f32.mrb[9].mxu1 }
 0x130   :  { %v745_v41 = vmax.f32 %v511_v26, %v513_v38  ;;  %v515_v42 = vpop.f32.mrb[10].mxu0  ;;  %v586_v31 = vpop.f32.mrb[10].mxu1 }
 0x131   :  { %v517_v60 = vpop.f32.mrb[11].mxu0  ;;  %v2688_v2 = vpop.f32.mrb[11].mxu1 }
 0x132   :  { %v752_v55 = vmax.f32 %v745_v41, %v582_v40  ;;  %v746_v63 = vmax.f32 %v515_v42, %v517_v60 }
 0x133   :  { %1742 = vmatmul.mubr.bf16.gmra.mrb[116].mxu0 %v2613_v15  ;;  %1813 = vmatmul.mubr.bf16.gmra.mrb[116].mxu1 %v2613_v15 }
 0x134   :  { %v759_v3 = vmax.f32 %v752_v55, %v2686_v58  ;;  %v753_v46 = vmax.f32 %v746_v63, %v586_v31  ;;  %1751 = vmatprep.mubr.bf16.mxu0 %v2908_v7  ;;  %1822 = vmatprep.mubr.bf16.mxu1 %v2908_v7 }
 0x136   :  { %v760_v48 = vmax.f32 %v753_v46, %v2688_v2  ;;  %v521_v0 = vpop.f32.mrb[12].mxu0  ;;  %v592_v57 = vpop.f32.mrb[12].mxu1 }
 0x137   :  { %v523_v56 = vpop.f32.mrb[13].mxu0  ;;  %v594_v50 = vpop.f32.mrb[13].mxu1 }
 0x138   :  { %v747_v16 = vmax.f32 %v521_v0, %v523_v56  ;;  %v525_v17 = vpop.f32.mrb[14].mxu0  ;;  %v596_v33 = vpop.f32.mrb[14].mxu1 }
 0x139   :  { %v526_v32 = vpop.f32.mrb[15].mxu0  ;;  %v597_v49 = vpop.f32.mrb[15].mxu1 }
 0x13a   :  { %v754_v13 = vmax.f32 %v747_v16, %v592_v57 }
 0x13b   :  { %1752 = vmatmul.mubr.bf16.gmra.mrb[120].mxu0 %v2627_v20  ;;  %1823 = vmatmul.mubr.bf16.gmra.mrb[120].mxu1 %v2627_v20 }
 0x13c   :  { %v761_v8 = vmax.f32 %v754_v13, %v594_v50  ;;  %1761 = vmatprep.mubr.bf16.mxu0 %v2908_v7  ;;  %1832 = vmatprep.mubr.bf16.mxu1 %v2908_v7 }
 0x13e   :  { %v633_v34 = vpop.f32.mrb[16].mxu0  ;;  %v704_v9 = vpop.f32.mrb[16].mxu1 }
 0x13f   :  { %v762_v4 = vmax.f32 %v755_v45, %v633_v34  ;;  %v635_v5 = vpop.f32.mrb[17].mxu0  ;;  %v2703_v11 = vpop.f32.mrb[17].mxu1 }
 0x140   :  { %v637_v10 = vpop.f32.mrb[18].mxu0  ;;  %v708_v21 = vpop.f32.mrb[18].mxu1 }
 0x141   :  { %v769_v15 = vmax.f32 %v762_v4, %v635_v5  ;;  %v763_v19 = vmax.f32 %v756_v51, %v637_v10  ;;  %v639_v20 = vpop.f32.mrb[19].mxu0  ;;  %v2708_v22 = vpop.f32.mrb[19].mxu1 }
 0x143   :  { %v2710_v7 = vmax.f32 %v769_v15, %v704_v9  ;;  %v770_v27 = vmax.f32 %v763_v19, %v639_v20  ;;  %1762 = vmatmul.mubr.bf16.gmra.mrb[124].mxu0 %v2641_v28  ;;  %1833 = vmatmul.mubr.bf16.gmra.mrb[124].mxu1 %v2641_v28 }
 0x145   :  { %v783_v29 = vmax.f32 %v2710_v7, %v2703_v11  ;;  %v2716_v30 = vmax.f32 %v770_v27, %v708_v21 }
 0x146   :  { %v643_v35 = vpop.f32.mrb[20].mxu0  ;;  %v714_v43 = vpop.f32.mrb[20].mxu1 }
 0x147   :  { %v784_v36 = vmax.f32 %v2716_v30, %v2708_v22  ;;  %v764_v37 = vmax.f32 %v757_v23, %v643_v35  ;;  %v645_v39 = vpop.f32.mrb[21].mxu0  ;;  %v2720_v45 = vpop.f32.mrb[21].mxu1 }
 0x148   :  { %v647_v44 = vpop.f32.mrb[22].mxu0  ;;  %v718_v53 = vpop.f32.mrb[22].mxu1 }
 0x149   :  { %v771_v47 = vmax.f32 %v764_v37, %v645_v39  ;;  %v765_v51 = vmax.f32 %v758_v25, %v647_v44  ;;  %v649_v52 = vpop.f32.mrb[23].mxu0  ;;  %v2722_v28 = vpop.f32.mrb[23].mxu1 }
 0x14b   :  { %v2724_v54 = vmax.f32 %v771_v47, %v714_v43  ;;  %v772_v59 = vmax.f32 %v765_v51, %v649_v52 }
 0x14d   :  { %v785_v61 = vmax.f32 %v2724_v54, %v2720_v45  ;;  %v2728_v62 = vmax.f32 %v772_v59, %v718_v53 }
 0x14e   :  { %v653_v1 = vpop.f32.mrb[24].mxu0  ;;  %v724_v18 = vpop.f32.mrb[24].mxu1 }
 0x14f   :  { %v786_v6 = vmax.f32 %v2728_v62, %v2722_v28  ;;  %v766_v12 = vmax.f32 %v759_v3, %v653_v1  ;;  %v655_v14 = vpop.f32.mrb[25].mxu0  ;;  %v2732_v24 = vpop.f32.mrb[25].mxu1 }
 0x150   :  { %v657_v23 = vpop.f32.mrb[26].mxu0  ;;  %v728_v40 = vpop.f32.mrb[26].mxu1 }
 0x151   :  { %v773_v25 = vmax.f32 %v766_v12, %v655_v14  ;;  %v767_v26 = vmax.f32 %v760_v48, %v657_v23  ;;  %v659_v38 = vpop.f32.mrb[27].mxu0  ;;  %v2734_v41 = vpop.f32.mrb[27].mxu1 }
 0x153   :  { %v2736_v42 = vmax.f32 %v773_v25, %v724_v18  ;;  %v774_v58 = vmax.f32 %v767_v26, %v659_v38 }
 0x155   :  { %v787_v60 = vmax.f32 %v2736_v42, %v2732_v24  ;;  %v2740_v31 = vmax.f32 %v774_v58, %v728_v40 }
 0x156   :  { %v663_v55 = vpop.f32.mrb[28].mxu0  ;;  %v734_v46 = vpop.f32.mrb[28].mxu1 }
 0x157   :  { %v788_v63 = vmax.f32 %v2740_v31, %v2734_v41  ;;  %v768_v2 = vmax.f32 %v761_v8, %v663_v55  ;;  %v665_v3 = vpop.f32.mrb[29].mxu0  ;;  %v2744_v0 = vpop.f32.mrb[29].mxu1 }
 0x158   :  { %v667_v48 = vpop.f32.mrb[30].mxu0  ;;  %v738_v16 = vpop.f32.mrb[30].mxu1 }
 0x159   :  { %v775_v56 = vmax.f32 %v768_v2, %v665_v3  ;;  %v668_v57 = vpop.f32.mrb[31].mxu0  ;;  %v739_v17 = vpop.f32.mrb[31].mxu1 }
 0x15b   :  { %v2746_v50 = vmax.f32 %v775_v56, %v734_v46 }
 0x15d   :  { %v789_v32 = vmax.f32 %v2746_v50, %v2744_v0 }
 0x15e   :  { %v853_v33 = vpop.f32.mrb[32].mxu0  ;;  %v924_v49 = vpop.f32.mrb[32].mxu1 }
 0x15f   :  { %v855_v13 = vpop.f32.mrb[33].mxu0  ;;  %v926_v8 = vpop.f32.mrb[33].mxu1 }
 0x160   :  { %v1103_v34 = vmax.f32 %v853_v33, %v855_v13  ;;  %v857_v4 = vpop.f32.mrb[34].mxu0  ;;  %v928_v9 = vpop.f32.mrb[34].mxu1 }
 0x161   :  { %v859_v5 = vpop.f32.mrb[35].mxu0  ;;  %v930_v19 = vpop.f32.mrb[35].mxu1 }
 0x162   :  { %v1110_v10 = vmax.f32 %v1103_v34, %v924_v49  ;;  %v1104_v15 = vmax.f32 %v857_v4, %v859_v5 }
 0x164   :  { %v1117_v20 = vmax.f32 %v1110_v10, %v926_v8  ;;  %v1111_v21 = vmax.f32 %v1104_v15, %v928_v9 }
 0x166   :  { %v1118_v27 = vmax.f32 %v1111_v21, %v930_v19  ;;  %v863_v35 = vpop.f32.mrb[36].mxu0  ;;  %v934_v39 = vpop.f32.mrb[36].mxu1 }
 0x167   :  { %v865_v37 = vpop.f32.mrb[37].mxu0  ;;  %v936_v47 = vpop.f32.mrb[37].mxu1 }
 0x168   :  { %v1105_v43 = vmax.f32 %v863_v35, %v865_v37  ;;  %v867_v44 = vpop.f32.mrb[38].mxu0  ;;  %v938_v52 = vpop.f32.mrb[38].mxu1 }
 0x169   :  { %v869_v51 = vpop.f32.mrb[39].mxu0  ;;  %v940_v1 = vpop.f32.mrb[39].mxu1 }
 0x16a   :  { %v1112_v53 = vmax.f32 %v1105_v43, %v934_v39  ;;  %v1106_v59 = vmax.f32 %v867_v44, %v869_v51 }
 0x16c   :  { %v1119_v12 = vmax.f32 %v1112_v53, %v936_v47  ;;  %v1113_v14 = vmax.f32 %v1106_v59, %v938_v52 }
 0x16e   :  { %v1120_v18 = vmax.f32 %v1113_v14, %v940_v1  ;;  %v873_v23 = vpop.f32.mrb[40].mxu0  ;;  %v944_v26 = vpop.f32.mrb[40].mxu1 }
 0x16f   :  { %v875_v25 = vpop.f32.mrb[41].mxu0  ;;  %v946_v58 = vpop.f32.mrb[41].mxu1 }
 0x170   :  { %v1107_v38 = vmax.f32 %v873_v23, %v875_v25  ;;  %v877_v40 = vpop.f32.mrb[42].mxu0  ;;  %v948_v2 = vpop.f32.mrb[42].mxu1 }
 0x171   :  { %v879_v55 = vpop.f32.mrb[43].mxu0  ;;  %v950_v48 = vpop.f32.mrb[43].mxu1 }
 0x172   :  { %v1114_v3 = vmax.f32 %v1107_v38, %v944_v26  ;;  %v1108_v46 = vmax.f32 %v877_v40, %v879_v55 }
 0x174   :  { %v1121_v56 = vmax.f32 %v1114_v3, %v946_v58  ;;  %v1115_v57 = vmax.f32 %v1108_v46, %v948_v2 }
 0x176   :  { %v1122_v16 = vmax.f32 %v1115_v57, %v950_v48  ;;  %v883_v17 = vpop.f32.mrb[44].mxu0  ;;  %v954_v13 = vpop.f32.mrb[44].mxu1 }
 0x177   :  { %v885_v33 = vpop.f32.mrb[45].mxu0  ;;  %v956_v4 = vpop.f32.mrb[45].mxu1 }
 0x178   :  { %v1109_v49 = vmax.f32 %v883_v17, %v885_v33  ;;  %v887_v34 = vpop.f32.mrb[46].mxu0  ;;  %v958_v5 = vpop.f32.mrb[46].mxu1 }
 0x179   :  { %v888_v8 = vpop.f32.mrb[47].mxu0  ;;  %v959_v10 = vpop.f32.mrb[47].mxu1 }
 0x17a   :  { %v1116_v9 = vmax.f32 %v1109_v49, %v954_v13 }
 0x17c   :  { %v1123_v15 = vmax.f32 %v1116_v9, %v956_v4 }
 0x17e   :  { %v995_v19 = vpop.f32.mrb[48].mxu0  ;;  %v1066_v37 = vpop.f32.mrb[48].mxu1 }
 0x17f   :  { %v1124_v21 = vmax.f32 %v1117_v20, %v995_v19  ;;  %v997_v35 = vpop.f32.mrb[49].mxu0  ;;  %v1068_v43 = vpop.f32.mrb[49].mxu1 }
 0x180   :  { %v999_v39 = vpop.f32.mrb[50].mxu0  ;;  %v1070_v52 = vpop.f32.mrb[50].mxu1 }
 0x181   :  { %v1131_v44 = vmax.f32 %v1124_v21, %v997_v35  ;;  %v1125_v47 = vmax.f32 %v1118_v27, %v999_v39  ;;  %v1001_v51 = vpop.f32.mrb[51].mxu0  ;;  %v1072_v53 = vpop.f32.mrb[51].mxu1 }
 0x183   :  { %v1138_v59 = vmax.f32 %v1131_v44, %v1066_v37  ;;  %v1132_v1 = vmax.f32 %v1125_v47, %v1001_v51 }
 0x185   :  { %v1145_v14 = vmax.f32 %v1138_v59, %v1068_v43  ;;  %v1139_v23 = vmax.f32 %v1132_v1, %v1070_v52 }
 0x186   :  { %v1005_v25 = vpop.f32.mrb[52].mxu0  ;;  %v1076_v58 = vpop.f32.mrb[52].mxu1 }
 0x187   :  { %v2753_v26 = vmax.f32 %v783_v29, %v1145_v14  ;;  %v1146_v20 = vmax.f32 %v1139_v23, %v1072_v53  ;;  %v1126_v38 = vmax.f32 %v1119_v12, %v1005_v25  ;;  %v1007_v40 = vpop.f32.mrb[53].mxu0  ;;  %v1078_v2 = vpop.f32.mrb[53].mxu1 }
 0x188   :  { %v1009_v55 = vpop.f32.mrb[54].mxu0  ;;  %v1080_v57 = vpop.f32.mrb[54].mxu1 }
 0x189   :  { %v2758_v27 = vmax.f32 %v784_v36, %v1146_v20  ;;  %v1133_v3 = vmax.f32 %v1126_v38, %v1007_v40  ;;  %v1127_v46 = vmax.f32 %v1120_v18, %v1009_v55  ;;  %v1011_v48 = vpop.f32.mrb[55].mxu0  ;;  %v1082_v17 = vpop.f32.mrb[55].mxu1 }
 0x18b   :  { %v1140_v33 = vmax.f32 %v1133_v3, %v1076_v58  ;;  %v1134_v11 = vmax.f32 %v1127_v46, %v1011_v48 }
 0x18d   :  { %v1147_v7 = vmax.f32 %v1140_v33, %v1078_v2  ;;  %v1141_v29 = vmax.f32 %v1134_v11, %v1080_v57 }
 0x18e   :  { %v1015_v13 = vpop.f32.mrb[56].mxu0  ;;  %v1086_v30 = vpop.f32.mrb[56].mxu1 }
 0x18f   :  { %v2763_v12 = vmax.f32 %v785_v61, %v1147_v7  ;;  %v1148_v49 = vmax.f32 %v1141_v29, %v1082_v17  ;;  %v1128_v34 = vmax.f32 %v1121_v56, %v1015_v13  ;;  %v1017_v22 = vpop.f32.mrb[57].mxu0  ;;  %v1088_v4 = vpop.f32.mrb[57].mxu1 }
 0x190   :  { %v1019_v36 = vpop.f32.mrb[58].mxu0  ;;  %v1090_v10 = vpop.f32.mrb[58].mxu1 }
 0x191   :  { %v2768_v18 = vmax.f32 %v786_v6, %v1148_v49  ;;  %v1135_v8 = vmax.f32 %v1128_v34, %v1017_v22  ;;  %v1129_v5 = vmax.f32 %v1122_v16, %v1019_v36  ;;  %v1021_v9 = vpop.f32.mrb[59].mxu0  ;;  %v1092_v19 = vpop.f32.mrb[59].mxu1 }
 0x193   :  { %v1142_v21 = vmax.f32 %v1135_v8, %v1086_v30  ;;  %v1136_v45 = vmax.f32 %v1129_v5, %v1021_v9 }
 0x195   :  { %v1149_v54 = vmax.f32 %v1142_v21, %v1088_v4  ;;  %v1143_v61 = vmax.f32 %v1136_v45, %v1090_v10 }
 0x196   :  { %v1025_v35 = vpop.f32.mrb[60].mxu0  ;;  %v1096_v62 = vpop.f32.mrb[60].mxu1 }
 0x197   :  { %v2773_v56 = vmax.f32 %v787_v60, %v1149_v54  ;;  %v1150_v37 = vmax.f32 %v1143_v61, %v1092_v19  ;;  %v1130_v39 = vmax.f32 %v1123_v15, %v1025_v35  ;;  %v1027_v28 = vpop.f32.mrb[61].mxu0  ;;  %v1098_v43 = vpop.f32.mrb[61].mxu1 }
 0x198   :  { %v1029_v6 = vpop.f32.mrb[62].mxu0  ;;  %v1100_v51 = vpop.f32.mrb[62].mxu1 }
 0x199   :  { %v2778_v16 = vmax.f32 %v788_v63, %v1150_v37  ;;  %v1137_v44 = vmax.f32 %v1130_v39, %v1027_v28  ;;  %v1030_v47 = vpop.f32.mrb[63].mxu0  ;;  %v1101_v52 = vpop.f32.mrb[63].mxu1 }
 0x19b   :  { %v1144_v53 = vmax.f32 %v1137_v44, %v1096_v62 }
 0x19d   :  { %v1151_v59 = vmax.f32 %v1144_v53, %v1098_v43 }
 0x19e   :  { %v1222_v24 = vpop.f32.mrb[64].mxu0  ;;  %v1293_v15 = vpop.f32.mrb[64].mxu1 }
 0x19f   :  { %v2783_v42 = vmax.f32 %v789_v32, %v1151_v59  ;;  %v1224_v60 = vpop.f32.mrb[65].mxu0  ;;  %v1295_v23 = vpop.f32.mrb[65].mxu1 }
 0x1a0   :  { %v1472_v1 = vmax.f32 %v1222_v24, %v1224_v60  ;;  %v1226_v14 = vpop.f32.mrb[66].mxu0  ;;  %v1297_v31 = vpop.f32.mrb[66].mxu1 }
 0x1a1   :  { %v1228_v41 = vpop.f32.mrb[67].mxu0  ;;  %v1299_v20 = vpop.f32.mrb[67].mxu1 }
 0x1a2   :  { %v1479_v63 = vmax.f32 %v1472_v1, %v1293_v15  ;;  %v1473_v25 = vmax.f32 %v1226_v14, %v1228_v41 }
 0x1a4   :  { %v1486_v38 = vmax.f32 %v1479_v63, %v1295_v23  ;;  %v1480_v40 = vmax.f32 %v1473_v25, %v1297_v31 }
 0x1a6   :  { %v1487_v58 = vmax.f32 %v1480_v40, %v1299_v20  ;;  %v1232_v55 = vpop.f32.mrb[68].mxu0  ;;  %v1303_v3 = vpop.f32.mrb[68].mxu1 }
 0x1a7   :  { %v1234_v2 = vpop.f32.mrb[69].mxu0  ;;  %v1305_v50 = vpop.f32.mrb[69].mxu1 }
 0x1a8   :  { %v1474_v46 = vmax.f32 %v1232_v55, %v1234_v2  ;;  %v1236_v0 = vpop.f32.mrb[70].mxu0  ;;  %v1307_v48 = vpop.f32.mrb[70].mxu1 }
 0x1a9   :  { %v1238_v32 = vpop.f32.mrb[71].mxu0  ;;  %v1309_v33 = vpop.f32.mrb[71].mxu1 }
 0x1aa   :  { %v1481_v57 = vmax.f32 %v1474_v46, %v1303_v3  ;;  %v1475_v17 = vmax.f32 %v1236_v0, %v1238_v32 }
 0x1ac   :  { %v1488_v11 = vmax.f32 %v1481_v57, %v1305_v50  ;;  %v1482_v7 = vmax.f32 %v1475_v17, %v1307_v48 }
 0x1ae   :  { %v1489_v29 = vmax.f32 %v1482_v7, %v1309_v33  ;;  %v1242_v13 = vpop.f32.mrb[72].mxu0  ;;  %v1313_v34 = vpop.f32.mrb[72].mxu1 }
 0x1af   :  { %v1244_v49 = vpop.f32.mrb[73].mxu0  ;;  %v1315_v36 = vpop.f32.mrb[73].mxu1 }
 0x1b0   :  { %v1476_v22 = vmax.f32 %v1242_v13, %v1244_v49  ;;  %v1246_v30 = vpop.f32.mrb[74].mxu0  ;;  %v1317_v8 = vpop.f32.mrb[74].mxu1 }
 0x1b1   :  { %v1248_v4 = vpop.f32.mrb[75].mxu0  ;;  %v1319_v10 = vpop.f32.mrb[75].mxu1 }
 0x1b2   :  { %v1483_v5 = vmax.f32 %v1476_v22, %v1313_v34  ;;  %v1477_v9 = vmax.f32 %v1246_v30, %v1248_v4 }
 0x1b4   :  { %v1490_v19 = vmax.f32 %v1483_v5, %v1315_v36  ;;  %v1484_v21 = vmax.f32 %v1477_v9, %v1317_v8 }
 0x1b6   :  { %v1491_v45 = vmax.f32 %v1484_v21, %v1319_v10  ;;  %v1252_v54 = vpop.f32.mrb[76].mxu0  ;;  %v1323_v35 = vpop.f32.mrb[76].mxu1 }
 0x1b7   :  { %v1254_v61 = vpop.f32.mrb[77].mxu0  ;;  %v1325_v28 = vpop.f32.mrb[77].mxu1 }
 0x1b8   :  { %v1478_v37 = vmax.f32 %v1252_v54, %v1254_v61  ;;  %v1256_v39 = vpop.f32.mrb[78].mxu0  ;;  %v1327_v6 = vpop.f32.mrb[78].mxu1 }
 0x1b9   :  { %v1257_v62 = vpop.f32.mrb[79].mxu0  ;;  %v1328_v44 = vpop.f32.mrb[79].mxu1 }
 0x1ba   :  { %v1485_v43 = vmax.f32 %v1478_v37, %v1323_v35 }
 0x1bc   :  { %v1492_v47 = vmax.f32 %v1485_v43, %v1325_v28 }
 0x1be   :  { %v1364_v51 = vpop.f32.mrb[80].mxu0  ;;  %v1435_v59 = vpop.f32.mrb[80].mxu1 }
 0x1bf   :  { %v1493_v52 = vmax.f32 %v1486_v38, %v1364_v51  ;;  %v1366_v53 = vpop.f32.mrb[81].mxu0  ;;  %v1437_v60 = vpop.f32.mrb[81].mxu1 }
 0x1c0   :  { %v1368_v24 = vpop.f32.mrb[82].mxu0  ;;  %v1439_v23 = vpop.f32.mrb[82].mxu1 }
 0x1c1   :  { %v1500_v15 = vmax.f32 %v1493_v52, %v1366_v53  ;;  %v1494_v1 = vmax.f32 %v1487_v58, %v1368_v24  ;;  %v1370_v14 = vpop.f32.mrb[83].mxu0  ;;  %v1441_v41 = vpop.f32.mrb[83].mxu1 }
 0x1c3   :  { %v1507_v31 = vmax.f32 %v1500_v15, %v1435_v59  ;;  %v1501_v63 = vmax.f32 %v1494_v1, %v1370_v14 }
 0x1c5   :  { %v1514_v25 = vmax.f32 %v1507_v31, %v1437_v60  ;;  %v1508_v20 = vmax.f32 %v1501_v63, %v1439_v23 }
 0x1c6   :  { %v1374_v40 = vpop.f32.mrb[84].mxu0  ;;  %v1445_v46 = vpop.f32.mrb[84].mxu1 }
 0x1c7   :  { %v2786_v55 = vmax.f32 %v2753_v26, %v1514_v25  ;;  %v1515_v2 = vmax.f32 %v1508_v20, %v1441_v41  ;;  %v1495_v3 = vmax.f32 %v1488_v11, %v1374_v40  ;;  %v1376_v38 = vpop.f32.mrb[85].mxu0  ;;  %v1447_v50 = vpop.f32.mrb[85].mxu1 }
 0x1c8   :  { %v1378_v0 = vpop.f32.mrb[86].mxu0  ;;  %v1449_v17 = vpop.f32.mrb[86].mxu1 }
 0x1c9   :  { %v2789_v32 = vmax.f32 %v2758_v27, %v1515_v2  ;;  %v1502_v58 = vmax.f32 %v1495_v3, %v1376_v38  ;;  %v1496_v48 = vmax.f32 %v1489_v29, %v1378_v0  ;;  %v1380_v57 = vpop.f32.mrb[87].mxu0  ;;  %v1451_v33 = vpop.f32.mrb[87].mxu1 }
 0x1cb   :  { %v1509_v7 = vmax.f32 %v1502_v58, %v1445_v46  ;;  %v1503_v13 = vmax.f32 %v1496_v48, %v1380_v57 }
 0x1cd   :  { %v1516_v49 = vmax.f32 %v1509_v7, %v1447_v50  ;;  %v1510_v34 = vmax.f32 %v1503_v13, %v1449_v17 }
 0x1ce   :  { %v1384_v26 = vpop.f32.mrb[88].mxu0  ;;  %v1455_v4 = vpop.f32.mrb[88].mxu1 }
 0x1cf   :  { %v2792_v22 = vmax.f32 %v2763_v12, %v1516_v49  ;;  %v1517_v11 = vmax.f32 %v1510_v34, %v1451_v33  ;;  %v1497_v30 = vmax.f32 %v1490_v19, %v1384_v26  ;;  %v1386_v36 = vpop.f32.mrb[89].mxu0  ;;  %v1457_v27 = vpop.f32.mrb[89].mxu1 }
 0x1d0   :  { %v1388_v8 = vpop.f32.mrb[90].mxu0  ;;  %v1459_v21 = vpop.f32.mrb[90].mxu1 }
 0x1d1   :  { %v2795_v5 = vmax.f32 %v2768_v18, %v1517_v11  ;;  %v1504_v29 = vmax.f32 %v1497_v30, %v1386_v36  ;;  %v1498_v9 = vmax.f32 %v1491_v45, %v1388_v8  ;;  %v1390_v10 = vpop.f32.mrb[91].mxu0  ;;  %v1461_v54 = vpop.f32.mrb[91].mxu1 }
 0x1d3   :  { %v1511_v61 = vmax.f32 %v1504_v29, %v1455_v4  ;;  %v1505_v35 = vmax.f32 %v1498_v9, %v1390_v10 }
 0x1d5   :  { %v1518_v37 = vmax.f32 %v1511_v61, %v1457_v27  ;;  %v1512_v39 = vmax.f32 %v1505_v35, %v1459_v21 }
 0x1d6   :  { %v1394_v12 = vpop.f32.mrb[92].mxu0  ;;  %v1465_v43 = vpop.f32.mrb[92].mxu1 }
 0x1d7   :  { %v2798_v28 = vmax.f32 %v2773_v56, %v1518_v37  ;;  %v1519_v19 = vmax.f32 %v1512_v39, %v1461_v54  ;;  %v1499_v62 = vmax.f32 %v1492_v47, %v1394_v12  ;;  %v1396_v6 = vpop.f32.mrb[93].mxu0  ;;  %v1467_v18 = vpop.f32.mrb[93].mxu1 }
 0x1d8   :  { %v1398_v44 = vpop.f32.mrb[94].mxu0  ;;  %v1469_v53 = vpop.f32.mrb[94].mxu1 }
 0x1d9   :  { %v2801_v51 = vmax.f32 %v2778_v16, %v1519_v19  ;;  %v1506_v45 = vmax.f32 %v1499_v62, %v1396_v6  ;;  %v1399_v52 = vpop.f32.mrb[95].mxu0  ;;  %v1470_v59 = vpop.f32.mrb[95].mxu1 }
 0x1db   :  { %v1513_v24 = vmax.f32 %v1506_v45, %v1465_v43 }
 0x1dd   :  { %v1520_v60 = vmax.f32 %v1513_v24, %v1467_v18 }
 0x1de   :  { %v1591_v15 = vpop.f32.mrb[96].mxu0  ;;  %v1662_v14 = vpop.f32.mrb[96].mxu1 }
 0x1df   :  { %v2804_v1 = vmax.f32 %v2783_v42, %v1520_v60  ;;  %v1593_v56 = vpop.f32.mrb[97].mxu0  ;;  %v1664_v41 = vpop.f32.mrb[97].mxu1 }
 0x1e0   :  { %v1841_v47 = vmax.f32 %v1591_v15, %v1593_v56  ;;  %v1595_v23 = vpop.f32.mrb[98].mxu0  ;;  %v1666_v63 = vpop.f32.mrb[98].mxu1 }
 0x1e1   :  { %v1597_v31 = vpop.f32.mrb[99].mxu0  ;;  %v1668_v20 = vpop.f32.mrb[99].mxu1 }
 0x1e2   :  { %v1848_v25 = vmax.f32 %v1841_v47, %v1662_v14  ;;  %v1842_v16 = vmax.f32 %v1595_v23, %v1597_v31 }
 0x1e4   :  { %v1855_v40 = vmax.f32 %v1848_v25, %v1664_v41  ;;  %v1849_v2 = vmax.f32 %v1842_v16, %v1666_v63 }
 0x1e6   :  { %v1856_v3 = vmax.f32 %v1849_v2, %v1668_v20  ;;  %v1601_v38 = vpop.f32.mrb[100].mxu0  ;;  %v1672_v0 = vpop.f32.mrb[100].mxu1  ;;  %v2824_v2 = vld [vmem:[%s2860_s2] ss:$0 sm:$0xff]  ;;  %s2129_s2 = smov [#allocation7]  }
 0x1e7   :  { %v1603_v46 = vpop.f32.mrb[101].mxu0  ;;  %v1674_v42 = vpop.f32.mrb[101].mxu1  ;;  %s1930_s13 = sshll.u32 %s2129_s2, 4  ;;  %s1931_s13 = int_to_ptr.vmem [resolvable:$true] %s1930_s13 }
 0x1e8   :  { %v1843_v50 = vmax.f32 %v1601_v38, %v1603_v46  ;;  %v1605_v58 = vpop.f32.mrb[102].mxu0  ;;  %v1676_v57 = vpop.f32.mrb[102].mxu1  ;;  %s2094_s14 = scalar_lea.vmem %s1931_s13, 896  ;;  %p2099_p3 = scmp.lt.s32.totalorder %s1931_s13, %s1931_s13 }
 0x1e9   :  { %v1607_v48 = vpop.f32.mrb[103].mxu0  ;;  %v1678_v7 = vpop.f32.mrb[103].mxu1  ;;  %p2095_p2 = scmp.ne.s32.totalorder %s1931_s13, %s2094_s14  ;;  %p2100_p4 = scmp.lt.s32.totalorder %s2094_s14, %s2094_s14 }
 0x1ea   :  { %v1850_v17 = vmax.f32 %v1843_v50, %v1672_v0  ;;  %v1844_v33 = vmax.f32 %v1605_v58, %v1607_v48 }
 0x1eb   :  { %p2101_p5 = por %p2100_p4, %p2099_p3 }
 0x1ec   :  { %v1857_v13 = vmax.f32 %v1850_v17, %v1674_v42  ;;  %v1851_v49 = vmax.f32 %v1844_v33, %v1676_v57 }
 0x1ed   :  { %p2102_p6 = pnand %p2101_p5, %p2095_p2 }
 0x1ee   :  { %v1858_v34 = vmax.f32 %v1851_v49, %v1678_v7  ;;  %v1611_v26 = vpop.f32.mrb[104].mxu0  ;;  %v1682_v30 = vpop.f32.mrb[104].mxu1 }
 0x1ef   :  { %v1613_v11 = vpop.f32.mrb[105].mxu0  ;;  %v2806_v8 = vpop.f32.mrb[105].mxu1 }
 0x1f0   :  { %v1845_v36 = vmax.f32 %v1611_v26, %v1613_v11  ;;  %v1615_v4 = vpop.f32.mrb[106].mxu0  ;;  %v1686_v29 = vpop.f32.mrb[106].mxu1 }
 0x1f1   :  { %v1617_v27 = vpop.f32.mrb[107].mxu0  ;;  %v2808_v21 = vpop.f32.mrb[107].mxu1 }
 0x1f2   :  { %v1852_v9 = vmax.f32 %v1845_v36, %v1682_v30  ;;  %v1846_v10 = vmax.f32 %v1615_v4, %v1617_v27 }
 0x1f4   :  { %v1859_v54 = vmax.f32 %v1852_v9, %v2806_v8  ;;  %v2811_v61 = vmax.f32 %v1846_v10, %v1686_v29 }
 0x1f6   :  { %v1860_v35 = vmax.f32 %v2811_v61, %v2808_v21  ;;  %v1621_v37 = vpop.f32.mrb[108].mxu0  ;;  %v1692_v12 = vpop.f32.mrb[108].mxu1 }
 0x1f7   :  { %v1623_v39 = vpop.f32.mrb[109].mxu0  ;;  %v2815_v6 = vpop.f32.mrb[109].mxu1 }
 0x1f8   :  { %v1847_v19 = vmax.f32 %v1621_v37, %v1623_v39  ;;  %v1625_v62 = vpop.f32.mrb[110].mxu0  ;;  %v1696_v44 = vpop.f32.mrb[110].mxu1 }
 0x1f9   :  { %v1626_v43 = vpop.f32.mrb[111].mxu0  ;;  %v1697_v45 = vpop.f32.mrb[111].mxu1 }
 0x1fa   :  { %v2817_v18 = vmax.f32 %v1847_v19, %v1692_v12 }
 0x1fc   :  { %v1861_v52 = vmax.f32 %v2817_v18, %v2815_v6 }
 0x1fe   :  { %v1733_v53 = vpop.f32.mrb[112].mxu0  ;;  %v1804_v60 = vpop.f32.mrb[112].mxu1 }
 0x1ff   :  { %v1862_v59 = vmax.f32 %v1855_v40, %v1733_v53  ;;  %v1735_v24 = vpop.f32.mrb[113].mxu0  ;;  %v1806_v56 = vpop.f32.mrb[113].mxu1 }
 0x200   :  { %v1737_v15 = vpop.f32.mrb[114].mxu0  ;;  %v1808_v41 = vpop.f32.mrb[114].mxu1 }
 0x201   :  { %v1869_v14 = vmax.f32 %v1862_v59, %v1735_v24  ;;  %v1863_v47 = vmax.f32 %v1856_v3, %v1737_v15  ;;  %v1739_v23 = vpop.f32.mrb[115].mxu0  ;;  %v1810_v31 = vpop.f32.mrb[115].mxu1 }
 0x203   :  { %v1876_v63 = vmax.f32 %v1869_v14, %v1804_v60  ;;  %v1870_v25 = vmax.f32 %v1863_v47, %v1739_v23 }
 0x205   :  { %v1883_v16 = vmax.f32 %v1876_v63, %v1806_v56  ;;  %v1877_v20 = vmax.f32 %v1870_v25, %v1808_v41 }
 0x206   :  { %v1743_v38 = vpop.f32.mrb[116].mxu0  ;;  %v1814_v58 = vpop.f32.mrb[116].mxu1 }
 0x207   :  { %v1890_v40 = vmax.f32 %v2786_v55, %v1883_v16  ;;  %v1884_v46 = vmax.f32 %v1877_v20, %v1810_v31  ;;  %v1864_v0 = vmax.f32 %v1857_v13, %v1743_v38  ;;  %v1745_v50 = vpop.f32.mrb[117].mxu0  ;;  %v1816_v42 = vpop.f32.mrb[117].mxu1 }
 0x208   :  { %v1747_v3 = vpop.f32.mrb[118].mxu0  ;;  %v1818_v49 = vpop.f32.mrb[118].mxu1 }
 0x209   :  { %v1904_v48 = vadd.f32 %v2824_v2, %v1890_v40  ;;  %v1891_v57 = vmax.f32 %v2789_v32, %v1884_v46  ;;  %v1871_v17 = vmax.f32 %v1864_v0, %v1745_v50  ;;  %v1865_v33 = vmax.f32 %v1858_v34, %v1747_v3  ;;  %v1749_v7 = vpop.f32.mrb[119].mxu0  ;;  %v1820_v26 = vpop.f32.mrb[119].mxu1 }
 0x20b   :  { %v1911_v11 = vmax.f32 %v1904_v48, 0.0  ;;  %v1905_v30 = vadd.f32 %v2824_v2, %v1891_v57  ;;  %v1878_v36 = vmax.f32 %v1871_v17, %v1814_v58  ;;  %v1872_v55 = vmax.f32 %v1865_v33, %v1749_v7 }
 0x20d   :  { %1918 = vst [vmem:[#allocation7] sm:$0xff] %v1911_v11  ;;  %v1912_v13 = vmax.f32 %v1905_v30, 0.0  ;;  %v1885_v4 = vmax.f32 %v1878_v36, %v1816_v42  ;;  %v1879_v8 = vmax.f32 %v1872_v55, %v1818_v49 }
 0x20e   :  { %v1753_v27 = vpop.f32.mrb[120].mxu0  ;;  %v1824_v34 = vpop.f32.mrb[120].mxu1 }
 0x20f   :  { %1919 = vst [vmem:[#allocation7 + $0x8] sm:$0xff] %v1912_v13  ;;  %v1892_v29 = vmax.f32 %v2792_v22, %v1885_v4  ;;  %v1886_v9 = vmax.f32 %v1879_v8, %v1820_v26  ;;  %v1866_v32 = vmax.f32 %v1859_v54, %v1753_v27  ;;  %v1755_v10 = vpop.f32.mrb[121].mxu0  ;;  %v1826_v39 = vpop.f32.mrb[121].mxu1 }
 0x210   :  { %v1757_v37 = vpop.f32.mrb[122].mxu0  ;;  %v1828_v45 = vpop.f32.mrb[122].mxu1 }
 0x211   :  { %v1906_v12 = vadd.f32 %v2824_v2, %v1892_v29  ;;  %v1893_v19 = vmax.f32 %v2795_v5, %v1886_v9  ;;  %v1873_v62 = vmax.f32 %v1866_v32, %v1755_v10  ;;  %v1867_v43 = vmax.f32 %v1860_v35, %v1757_v37  ;;  %v1759_v44 = vpop.f32.mrb[123].mxu0  ;;  %v1830_v53 = vpop.f32.mrb[123].mxu1 }
 0x213   :  { %v1913_v59 = vmax.f32 %v1906_v12, 0.0  ;;  %v1907_v22 = vadd.f32 %v2824_v2, %v1893_v19  ;;  %v1880_v54 = vmax.f32 %v1873_v62, %v1824_v34  ;;  %v1874_v24 = vmax.f32 %v1867_v43, %v1759_v44 }
 0x215   :  { %1920 = vst [vmem:[#allocation7 + $0x10] sm:$0xff] %v1913_v59  ;;  %v1914_v60 = vmax.f32 %v1907_v22, 0.0  ;;  %v1887_v15 = vmax.f32 %v1880_v54, %v1826_v39  ;;  %v1881_v56 = vmax.f32 %v1874_v24, %v1828_v45 }
 0x216   :  { %v1763_v14 = vpop.f32.mrb[124].mxu0  ;;  %v1834_v35 = vpop.f32.mrb[124].mxu1 }
 0x217   :  { %1921 = vst [vmem:[#allocation7 + $0x18] sm:$0xff] %v1914_v60  ;;  %v1894_v5 = vmax.f32 %v2798_v28, %v1887_v15  ;;  %v1888_v47 = vmax.f32 %v1881_v56, %v1830_v53  ;;  %v1868_v21 = vmax.f32 %v1861_v52, %v1763_v14  ;;  %v1765_v61 = vpop.f32.mrb[125].mxu0  ;;  %v1836_v41 = vpop.f32.mrb[125].mxu1 }
 0x218   :  { %v1767_v23 = vpop.f32.mrb[126].mxu0  ;;  %v1838_v20 = vpop.f32.mrb[126].mxu1 }
 0x219   :  { %v1908_v31 = vadd.f32 %v2824_v2, %v1894_v5  ;;  %v1895_v63 = vmax.f32 %v2801_v51, %v1888_v47  ;;  %v1875_v25 = vmax.f32 %v1868_v21, %v1765_v61  ;;  %v1768_v16 = vpop.f32.mrb[127].mxu0  ;;  %v1839_v38 = vpop.f32.mrb[127].mxu1 }
 0x21b   :  { %v1915_v40 = vmax.f32 %v1908_v31, 0.0  ;;  %v1909_v28 = vadd.f32 %v2824_v2, %v1895_v63  ;;  %v1882_v46 = vmax.f32 %v1875_v25, %v1834_v35 }
 0x21d   :  { %1922 = vst [vmem:[#allocation7 + $0x20] sm:$0xff] %v1915_v40  ;;  %v1916_v0 = vmax.f32 %v1909_v28, 0.0  ;;  %v1889_v6 = vmax.f32 %v1882_v46, %v1836_v41 }
 0x21f   :  { %1923 = vst [vmem:[#allocation7 + $0x28] sm:$0xff] %v1916_v0  ;;  %v1896_v18 = vmax.f32 %v2804_v1, %v1889_v6 }
 0x221   :  { %v1910_v52 = vadd.f32 %v2824_v2, %v1896_v18 }
 0x223   :  { %v1917_v51 = vmax.f32 %v1910_v52, 0.0 }
 0x225   :  { %1924 = vst [vmem:[#allocation7 + $0x30] sm:$0xff] %v1917_v51 }
 0x226   :  { %2105 = shalt.err (!%p2102_p6)
}
 0x227   :  { %s2106_s17 = scalar_lea.hbm %s2861_s3, 896 }
 0x228   :  { %p2107_p7 = scmp.ne.s32.totalorder %s2861_s3, %s2106_s17  ;;  %p2110_p8 = scmp.lt.u32.totalorder %s2106_s17, %s2861_s3 }
 0x22a   :  { %p2112_p9 = pnand %p2110_p8, %p2107_p7 }
 0x22c   :  { %2115 = shalt.err (!%p2112_p9)
}
 0x22d   :  { %s2130_s22 = smov 128   ;;  %s2131_s23 = smov 8  }
 0x22e   :  { %1936 = dma.vmem_to_hbm [thread:$0]  %s1931_s13, 896, %s2861_s3, [#allocation4], %s2130_s22, %s2130_s22, %s2131_s23  }
 0x22f   :  { %2120 = dma.done.wait [#allocation4], 896  }
 0x230   :  { %2121 = vsyncadd [#allocation4], 4294966400 }
 0x231   :  { %1940 = vsyncpa [#allocation3], 1 }
 0x232   :  { %1941 = vsyncpa [#allocation6], 1 }
 0x233   :  { %1942 = vsyncpa [#allocation4], 1 }

</bundles_post_ra>
